<compile_context>
chip_gen: v7x
topology: tpu7x:2x2x1
jax: 0.10.0
libtpu: 0.0.40
codegen_flags: <defaults>
</compile_context>

<pallas_src>
import functools
import itertools

import numpy as np

import jax
import jax.numpy as jnp
from jax.experimental import pallas as pl
from jax.experimental.pallas import tpu as pltpu

try:
    from scipy.optimize import linear_sum_assignment as _scipy_lsa
except Exception:  # pragma: no cover
    _scipy_lsa = None


def _round_up(x, m):
    return (x + m - 1) // m * m


def linear_sum_assignment(cost):
    """scipy's LSA with a tiny brute-force fallback for small problems."""
    if _scipy_lsa is not None:
        return _scipy_lsa(cost)
    # TODO(synk): fallback only valid for small problems (scipy unavailable).
    cost = np.asarray(cost)
    n_r, n_c = cost.shape
    if n_r == 0 or n_c == 0:
        return np.array([], np.int64), np.array([], np.int64)
    if n_r >= n_c:
        best, best_rows = None, None
        for rows in itertools.permutations(range(n_r), n_c):
            s = cost[list(rows), range(n_c)].sum()
            if best is None or s < best:
                best, best_rows = s, rows
        return np.asarray(best_rows, np.int64), np.arange(n_c, dtype=np.int64)
    best, best_cols = None, None
    for cols in itertools.permutations(range(n_c), n_r):
        s = cost[range(n_r), list(cols)].sum()
        if best is None or s < best:
            best, best_cols = s, cols
    return np.arange(n_r, dtype=np.int64), np.asarray(best_cols, np.int64)


# ---------------------------------------------------------------------------
# In-kernel math helpers (operate on 2-D [rows, lanes] values)
# ---------------------------------------------------------------------------
def _pow(x, g):
    # g is a Python float -> specialized at trace time (no exp/log chain for small ints).
    if g == 0.0:
        return jnp.ones_like(x)
    if g == 1.0:
        return x
    if g == 2.0:
        return x * x
    if g == 3.0:
        return x * x * x
    return jnp.exp(g * jnp.log(jnp.maximum(x, 1e-30)))


def _pairwise_l1(ob, tb_t):
    # ob: [TN, 4] query boxes, tb_t: [4, M] target boxes (transposed) -> [TN, M]
    c = jnp.abs(ob[:, 0:1] - tb_t[0:1, :])
    for d in range(1, 4):
        c = c + jnp.abs(ob[:, d:d + 1] - tb_t[d:d + 1, :])
    return c


def _pairwise_neg_giou(ob, tb_t):
    # cxcywh boxes. ob: [TN, 4], tb_t: [4, M] -> -GIoU, [TN, M]
    ax0 = ob[:, 0:1] - 0.5 * ob[:, 2:3]
    ay0 = ob[:, 1:2] - 0.5 * ob[:, 3:4]
    ax1 = ob[:, 0:1] + 0.5 * ob[:, 2:3]
    ay1 = ob[:, 1:2] + 0.5 * ob[:, 3:4]
    bx0 = tb_t[0:1, :] - 0.5 * tb_t[2:3, :]
    by0 = tb_t[1:2, :] - 0.5 * tb_t[3:4, :]
    bx1 = tb_t[0:1, :] + 0.5 * tb_t[2:3, :]
    by1 = tb_t[1:2, :] + 0.5 * tb_t[3:4, :]
    area_a = (ax1 - ax0) * (ay1 - ay0)            # [TN, 1]
    area_b = (bx1 - bx0) * (by1 - by0)            # [1, M]
    inter = (jnp.maximum(jnp.minimum(ax1, bx1) - jnp.maximum(ax0, bx0), 0.0)
             * jnp.maximum(jnp.minimum(ay1, by1) - jnp.maximum(ay0, by0), 0.0))
    union = area_a + area_b - inter
    iou = inter / jnp.maximum(union, 1e-12)
    area_c = (jnp.maximum(jnp.maximum(ax1, bx1) - jnp.minimum(ax0, bx0), 0.0)
              * jnp.maximum(jnp.maximum(ay1, by1) - jnp.minimum(ay0, by0), 0.0))
    giou = iou - (area_c - union) / jnp.maximum(area_c, 1e-12)
    return -giou


def _class_box_giou_cost(qp, taux, cc, cb, cg, focal_alpha, focal_gamma):
    """Class + L1-box + GIoU cost for one row tile. Returns (cost, keep_mask)."""
    t0 = taux[0:1, :]
    t1 = taux[1:2, :]
    tbox = taux[2:10, :]
    keep_on = taux[10:11, :] > 0.5

    lg0 = qp[:, 0:1]
    lg1 = qp[:, 1:2]
    obox = qp[:, 2:10]

    # classification cost (softmax over 2 classes), rank-1 form:
    #   cost = (A0+A1) + (B0-A0)*t0 + (B1-A1)*t1
    a, g = focal_alpha, focal_gamma
    p0 = 1.0 / (1.0 + jnp.exp(lg1 - lg0))
    p1 = 1.0 - p0
    A0 = a * _pow(1.0 - p0, g) * (-jnp.log(p0 + 1e-8))
    B0 = -(1.0 - a) * _pow(p0, g) * jnp.log(1.0 - p0 + 1e-8)
    A1 = a * _pow(1.0 - p1, g) * (-jnp.log(p1 + 1e-8))
    B1 = -(1.0 - a) * _pow(p1, g) * jnp.log(1.0 - p1 + 1e-8)
    cost = cc * ((A0 + A1) + (B0 - A0) * t0 + (B1 - A1) * t1)

    # box / giou costs; running accumulation keeps [TN, M] live temps to a minimum
    cost = cost + cb * _pairwise_l1(obox[:, :4], tbox[:4, :])
    cost = cost + cg * _pairwise_neg_giou(obox[:, :4], tbox[:4, :])
    second = (cb * _pairwise_l1(obox[:, 4:], tbox[4:, :])
              + cg * _pairwise_neg_giou(obox[:, 4:], tbox[4:, :]))
    cost = cost + jnp.where(keep_on, second, 0.0)
    return cost, keep_on


# ---------------------------------------------------------------------------
# Kernels
# ---------------------------------------------------------------------------
def _cost_kernel_nomask(qpack_ref, taux_ref, cost_ref, *,
                        weights, focal_alpha, focal_gamma):
    cc, cb, cg = weights
    cost, _ = _class_box_giou_cost(qpack_ref[...], taux_ref[...],
                                   cc, cb, cg, focal_alpha, focal_gamma)
    cost_ref[...] = cost


def _cost_kernel_masks(qpack_ref, om0_ref, om1_ref, taux_ref, tm0_ref, tm1_ref,
                       cost_ref,
                       xt0_acc, xt1_acc, st0_acc, st1_acc, nrs0_acc, nrs1_acc,
                       *, weights, focal_alpha, focal_gamma, num_points, ones_col):
    cc, cb, cg, cm, cd = weights
    p_step = pl.program_id(1)
    p_last = pl.num_programs(1) - 1

    @pl.when(p_step == 0)
    def _init():
        xt0_acc[...] = jnp.zeros_like(xt0_acc)
        xt1_acc[...] = jnp.zeros_like(xt1_acc)
        st0_acc[...] = jnp.zeros_like(st0_acc)
        st1_acc[...] = jnp.zeros_like(st1_acc)
        nrs0_acc[...] = jnp.zeros_like(nrs0_acc)
        nrs1_acc[...] = jnp.zeros_like(nrs1_acc)

    # ---- accumulate mask CE / dice partials over the point axis ----
    def accumulate(om_ref, tm_ref, xt_acc, st_acc, nrs_acc):
        x_bf = om_ref[...]                                    # [TN, TP] bf16
        t_bf = tm_ref[...]                                    # [TP, M ] bf16
        x = x_bf.astype(jnp.float32)
        # 1 exp + 1 log + 1 approx-reciprocal per element (EUP is the inner-loop limiter)
        e = jnp.exp(-jnp.abs(x))
        one_pe = 1.0 + e
        neg = jnp.maximum(x, 0.0) + jnp.log(one_pe)           # softplus(x) = BCE(x, 0)
        sig = jnp.where(x >= 0.0, 1.0, e) * pl.reciprocal(one_pe, approx=True)
        # Stack [x ; sigmoid] -> one (2*TN)-row matmul per head (fills 256-wide MXU).
        lhs = jnp.concatenate([x_bf, sig.astype(jnp.bfloat16)], axis=0)
        res = jnp.dot(lhs, t_bf, preferred_element_type=jnp.float32)   # [2*TN, M]
        tn = x_bf.shape[0]
        xt_acc[...] += res[:tn, :]           # x @ t
        st_acc[...] += res[tn:, :]           # sig @ t ; column ones_col = rowsum(sig)
        nrs_acc[...] += jnp.sum(neg, axis=1, keepdims=True)

    accumulate(om0_ref, tm0_ref, xt0_acc, st0_acc, nrs0_acc)
    accumulate(om1_ref, tm1_ref, xt1_acc, st1_acc, nrs1_acc)

    # ---- finalize: class/box/giou costs + combine with the accumulated mask costs ----
    @pl.when(p_step == p_last)
    def _finalize():
        taux = taux_ref[...]                                  # [16, M] f32
        cost, keep_on = _class_box_giou_cost(qpack_ref[...], taux,
                                             cc, cb, cg, focal_alpha, focal_gamma)
        inv_p = 1.0 / float(num_points)
        t0sum = taux[11:12, :]
        t1sum = taux[12:13, :]

        # head 0 (always on):  CE = (rowsum(softplus) - x@t)/P ; dice uses the free
        # rowsum(sigmoid) column of the sig@t accumulator.
        st0 = st0_acc[...]
        sg0 = st0[:, ones_col:ones_col + 1]
        cost = cost + cm * ((nrs0_acc[...] - xt0_acc[...]) * inv_p)
        cost = cost + cd * (1.0 - (2.0 * st0 + 1.0) / (sg0 + t0sum + 1.0))

        # head 1: only on `keep` targets; where() keeps masked columns clean.
        st1 = st1_acc[...]
        sg1 = st1[:, ones_col:ones_col + 1]
        ce1 = (nrs1_acc[...] - xt1_acc[...]) * inv_p
        dice1 = 1.0 - (2.0 * st1 + 1.0) / (sg1 + t1sum + 1.0)
        cost = cost + jnp.where(keep_on, cm * ce1 + cd * dice1, 0.0)

        cost_ref[...] = cost


# ---------------------------------------------------------------------------
# Wrapper around pallas_call
# ---------------------------------------------------------------------------
def _vmem_estimate_bytes(tile_n, tile_p, m_pad):
    om = 2 * 2 * tile_n * tile_p * 2            # 2 heads x double-buffer x bf16
    tm = 2 * 2 * tile_p * m_pad * 2
    taux = 2 * 16 * m_pad * 4
    qp = 2 * tile_n * 16 * 4
    out = 2 * tile_n * m_pad * 4
    acc = 4 * tile_n * m_pad * 4 + 2 * tile_n * 128 * 4
    return om + tm + taux + qp + out + acc


def compute_cost_matrix_pallas(logits, out_bbox, tgt_ids, tgt_bbox, keep,
                               weights, focal_alpha, focal_gamma,
                               out_m0=None, out_m1=None, tgt_m0=None, tgt_m1=None,
                               tile_n=128, tile_p=2048):
    """Returns the [N, M] weighted cost matrix (N = B*Q queries, M = total targets)."""
    n = logits.shape[0]
    m = tgt_ids.shape[0]
    f32 = jnp.float32
    bf16 = jnp.bfloat16

    cc, cb, cg, cm, cd = (float(w) for w in weights)
    use_masks = (out_m0 is not None) and (cm != 0.0 or cd != 0.0)

    tile_n = max(16, min(tile_n, _round_up(n, 16)))
    n_pad = _round_up(n, tile_n)
    # +1 spare padded column guarantees a free lane for the in-matmul ones column.
    m_pad = _round_up(m + 1, 128)
    ones_col = m

    # per-query packed small features: [N, 16] = [logits(2) | boxes(8) | pad]
    qpack = jnp.zeros((n_pad, 16), f32)
    qpack = qpack.at[:, 2:10].set(0.25)                       # benign padded boxes
    qpack = qpack.at[:n, 0:2].set(logits.astype(f32))
    qpack = qpack.at[:n, 2:10].set(out_bbox.astype(f32))

    # per-target packed small features: [16, M_pad]
    #   rows 0-1: labels^T, 2-9: boxes^T, 10: keep, 11-12: sum_P(tgt_m{0,1}), 13-15: pad
    taux = jnp.zeros((16, m_pad), f32)
    taux = taux.at[2:10, :].set(0.25)                         # benign padded boxes
    taux = taux.at[0:2, :m].set(tgt_ids.astype(f32).T)
    taux = taux.at[2:10, :m].set(tgt_bbox.astype(f32).T)
    taux = taux.at[10, :m].set(keep.astype(f32))

    if not use_masks:
        # Trace-time specialization: finalize-only kernel, no point axis, no accumulators.
        kernel = functools.partial(_cost_kernel_nomask,
                                   weights=(cc, cb, cg),
                                   focal_alpha=float(focal_alpha),
                                   focal_gamma=float(focal_gamma))
        cost = pl.pallas_call(
            kernel,
            out_shape=jax.ShapeDtypeStruct((n_pad, m_pad), f32),
            grid_spec=pltpu.PrefetchScalarGridSpec(
                num_scalar_prefetch=0,
                grid=(n_pad // tile_n,),
                in_specs=[
                    pl.BlockSpec((tile_n, 16), lambda i: (i, 0)),
                    pl.BlockSpec((16, m_pad), lambda i: (0, 0)),
                ],
                out_specs=pl.BlockSpec((tile_n, m_pad), lambda i: (i, 0)),
            ),
            compiler_params=pltpu.CompilerParams(
                dimension_semantics=("parallel",)),
        )(qpack, taux)
        return cost[:n, :m]

    p = out_m0.shape[1]
    tile_p = max(128, min(tile_p, _round_up(p, 128)))
    # VMEM budget guard (v7x has 64 MiB per TensorCore): shrink tile_p until the
    # resident set fits comfortably.
    while _vmem_estimate_bytes(tile_n, tile_p, m_pad) > (36 << 20) and tile_p > 256:
        tile_p //= 2
    p_pad = _round_up(p, tile_p)
    # TODO(synk): very large M would additionally need an M tile axis; not implemented
    # (typical detection workloads keep M at a few hundred targets).

    # hoisted dice denominators (sum over real points only)
    taux = taux.at[11, :m].set(jnp.sum(tgt_m0.astype(f32), axis=1))
    taux = taux.at[12, :m].set(jnp.sum(tgt_m1.astype(f32), axis=1))

    # per-query mask point logits, built directly in bf16; padded points are -30 so
    # their sigmoid/softplus contributions to the row sums are ~0.
    def pad_om(x):
        buf = jnp.full((n_pad, p_pad), -30.0, bf16)
        return buf.at[:n, :p].set(x.astype(bf16))

    # target mask points, transposed so P is the MXU contraction dim; the spare padded
    # column `ones_col` is set to 1.0 so rowsum(sigmoid) falls out of the sig@t matmul.
    def pad_tm(x):
        buf = jnp.zeros((p_pad, m_pad), bf16)
        buf = buf.at[:p, :m].set(x.astype(bf16).T)
        buf = buf.at[:p, ones_col].set(jnp.ones((p,), bf16))
        return buf

    om0 = pad_om(out_m0)
    om1 = pad_om(out_m1)
    tm0 = pad_tm(tgt_m0)
    tm1 = pad_tm(tgt_m1)

    kernel = functools.partial(
        _cost_kernel_masks,
        weights=(cc, cb, cg, cm, cd),
        focal_alpha=float(focal_alpha),
        focal_gamma=float(focal_gamma),
        num_points=int(p),
        ones_col=ones_col,
    )

    vmem_limit = int(min(60 << 20,
                         max(32 << 20,
                             1.4 * _vmem_estimate_bytes(tile_n, tile_p, m_pad))))

    grid = (n_pad // tile_n, p_pad // tile_p)
    cost = pl.pallas_call(
        kernel,
        out_shape=jax.ShapeDtypeStruct((n_pad, m_pad), f32),
        grid_spec=pltpu.PrefetchScalarGridSpec(
            num_scalar_prefetch=0,
            grid=grid,
            in_specs=[
                pl.BlockSpec((tile_n, 16), lambda i, k: (i, 0)),       # packed logits+boxes
                pl.BlockSpec((tile_n, tile_p), lambda i, k: (i, k)),   # out mask pts head0
                pl.BlockSpec((tile_n, tile_p), lambda i, k: (i, k)),   # out mask pts head1
                pl.BlockSpec((16, m_pad), lambda i, k: (0, 0)),        # packed target aux
                pl.BlockSpec((tile_p, m_pad), lambda i, k: (k, 0)),    # tgt mask pts^T head0
                pl.BlockSpec((tile_p, m_pad), lambda i, k: (k, 0)),    # tgt mask pts^T head1
            ],
            out_specs=pl.BlockSpec((tile_n, m_pad), lambda i, k: (i, 0)),
            scratch_shapes=[
                pltpu.VMEM((tile_n, m_pad), f32),   # x@t accumulator head0
                pltpu.VMEM((tile_n, m_pad), f32),   # x@t accumulator head1
                pltpu.VMEM((tile_n, m_pad), f32),   # sig@t accumulator head0
                pltpu.VMEM((tile_n, m_pad), f32),   # sig@t accumulator head1
                pltpu.VMEM((tile_n, 1), f32),       # rowsum(softplus) head0
                pltpu.VMEM((tile_n, 1), f32),       # rowsum(softplus) head1
            ],
        ),
        compiler_params=pltpu.CompilerParams(
            dimension_semantics=("parallel", "arbitrary"),
            vmem_limit_bytes=vmem_limit),
    )(qpack, om0, om1, taux, tm0, tm1)
    return cost[:n, :m]


# ---------------------------------------------------------------------------
# Plain-JAX glue: point_sample (grid_sample bilinear, align_corners=False)
# ---------------------------------------------------------------------------
def point_sample(masks, coords):
    # masks: [N, C, H, W]; coords: [P, 2] in [0, 1], (x, y); same coords for all N.
    n, c, h, w = masks.shape
    gx = 2.0 * coords[:, 0] - 1.0
    gy = 2.0 * coords[:, 1] - 1.0
    ix = ((gx + 1.0) * w - 1.0) * 0.5
    iy = ((gy + 1.0) * h - 1.0) * 0.5
    x0 = jnp.floor(ix)
    y0 = jnp.floor(iy)
    x1 = x0 + 1.0
    y1 = y0 + 1.0
    w00 = (x1 - ix) * (y1 - iy)
    w01 = (ix - x0) * (y1 - iy)
    w10 = (x1 - ix) * (iy - y0)
    w11 = (ix - x0) * (iy - y0)
    flat = masks.reshape(n, c, h * w)

    def gather(xi, yi, wgt):
        valid = ((xi >= 0) & (xi <= w - 1) & (yi >= 0) & (yi <= h - 1)).astype(jnp.float32)
        xc = jnp.clip(xi, 0, w - 1).astype(jnp.int32)
        yc = jnp.clip(yi, 0, h - 1).astype(jnp.int32)
        idx = yc * w + xc
        return flat[:, :, idx] * (wgt * valid)[None, None, :]

    return (gather(x0, y0, w00) + gather(x1, y0, w01)
            + gather(x0, y1, w10) + gather(x1, y1, w11))        # [N, C, P]


# ---------------------------------------------------------------------------
# HungarianMatcher wrapper (forward pass)
# ---------------------------------------------------------------------------
class HungarianMatcherPallas:
    def __init__(self, cost_class=1.0, cost_bbox=1.0, cost_giou=1.0,
                 cost_mask=1.0, cost_dice=1.0, num_points=10000,
                 focal_loss=False, focal_alpha=0.25, focal_gamma=2.0,
                 match_masks=False):
        assert cost_class != 0 or cost_bbox != 0 or cost_giou != 0, "all costs cant be 0"
        self.cost_class = cost_class
        self.cost_bbox = cost_bbox
        self.cost_giou = cost_giou
        self.cost_mask = cost_mask
        self.cost_dice = cost_dice
        self.num_points = num_points
        self.focal_loss = focal_loss
        self.focal_alpha = focal_alpha
        self.focal_gamma = focal_gamma
        self.match_masks = match_masks
        self._debug = {}

    def __call__(self, outputs, targets, training_method, target_name):
        bsz, num_queries = outputs['pred_logits'].shape[:2]
        tdicts = [t[training_method][target_name] for t in targets]

        if sum(int(td['empty']) for td in tdicts) == bsz:
            ind = [(np.array([], np.int64), np.array([], np.int64)) for _ in range(bsz)]
            for i, td in zip(ind, tdicts):
                td['indices'] = i
            return ind, targets

        # TODO(synk): focal_loss branch and the track-query division path
        # ('track_query_match_ids') are not implemented; only the default
        # softmax / no-track-query path is covered.
        assert not self.focal_loss
        num_tqs = 0

        logits = outputs['pred_logits'].reshape(bsz * num_queries, -1)
        out_bbox = outputs['pred_boxes'].reshape(bsz * num_queries, -1)

        tgt_ids = jnp.concatenate([td['labels'] for td in tdicts if not td['empty']], axis=0)
        tgt_bbox = jnp.concatenate([td['boxes'] for td in tdicts if not td['empty']], axis=0)
        keep = (tgt_ids[:, 1] == 0)

        mask_args = {}
        cm_w, cd_w = 0.0, 0.0
        if self.match_masks and 'pred_masks' in outputs:
            pm = outputs['pred_masks']
            out_mask = pm.reshape(bsz * num_queries, *pm.shape[2:])          # [N, 2, H, W]
            tgt_mask = jnp.concatenate(
                [td['masks'] for td in tdicts if not td['empty']], axis=0
            ).astype(jnp.float32)                                            # [M, 2, H, W]
            h, w = out_mask.shape[-2:]
            # NOTE: synthetic target masks are generated at the prediction resolution,
            # so F.interpolate(tgt_mask, size=out_mask.shape[-2:]) is the identity here.
            num_points = min(self.num_points, h * w)
            coords = jax.random.uniform(jax.random.PRNGKey(1), (num_points, 2), jnp.float32)
            out_pts = point_sample(out_mask, coords)                         # [N, 2, P]
            tgt_pts = point_sample(tgt_mask, coords)                         # [M, 2, P]
            mask_args = dict(out_m0=out_pts[:, 0], out_m1=out_pts[:, 1],
                             tgt_m0=tgt_pts[:, 0], tgt_m1=tgt_pts[:, 1])
            cm_w, cd_w = self.cost_mask, self.cost_dice

        weights = (self.cost_class, self.cost_bbox, self.cost_giou, cm_w, cd_w)
        cost = compute_cost_matrix_pallas(
            logits, out_bbox, tgt_ids, tgt_bbox, keep,
            weights, self.focal_alpha, self.focal_gamma, **mask_args)
        cost = jax.block_until_ready(cost)

        self._debug = dict(cost=cost, logits=logits, out_bbox=out_bbox,
                           tgt_ids=tgt_ids, tgt_bbox=tgt_bbox, keep=keep,
                           weights=weights, **mask_args)

        cost_matrix = np.asarray(cost).reshape(bsz, num_queries + num_tqs, -1)
        sizes = [0 if td['empty'] else int(td['labels'].shape[0]) for td in tdicts]
        # TODO(synk): the data-dependent per-batch track-query inf-masking loop and the
        # threshold_indices helper are host-side parts of the original not needed for
        # targets without 'track_query_match_ids'; skipped.
        splits = np.split(cost_matrix, np.cumsum(sizes)[:-1], axis=-1)
        indices = [linear_sum_assignment(c[i]) for i, c in enumerate(splits)]

        ind = []
        for (i_idx, j_idx), td in zip(indices, tdicts):
            if td['empty']:
                ind.append((np.array([], np.int64), np.array([], np.int64)))
            else:
                ind.append((np.asarray(i_idx, np.int64), np.asarray(j_idx, np.int64)))
        for i, td in zip(ind, tdicts):
            td['indices'] = i
        return ind, targets


# ---------------------------------------------------------------------------
# Pure-JAX reference (mirrors the PyTorch math) for validation
# ---------------------------------------------------------------------------
def reference_cost_matrix(logits, out_bbox, out_m0, out_m1, tgt_ids, tgt_bbox,
                          tgt_m0, tgt_m1, keep, weights, alpha, gamma):
    cc, cb, cg, cm, cd = weights
    out_prob = jax.nn.softmax(logits, axis=-1)
    n, m = out_prob.shape[0], tgt_ids.shape[0]
    t0 = jnp.tile(tgt_ids[:, 0][None, :].astype(jnp.float32), (n, 1))
    t1 = jnp.tile(tgt_ids[:, 1][None, :].astype(jnp.float32), (n, 1))
    p0 = jnp.tile(out_prob[:, :1], (1, m))
    p1 = jnp.tile(out_prob[:, 1:], (1, m))
    cost_class = (alpha * (1 - p0) ** gamma * -(1 - t0) * jnp.log(p0 + 1e-8)
                  - (1 - alpha) * p0 ** gamma * t0 * jnp.log(1 - p0 + 1e-8)
                  + alpha * (1 - p1) ** gamma * -(1 - t1) * jnp.log(p1 + 1e-8)
                  - (1 - alpha) * p1 ** gamma * t1 * jnp.log(1 - p1 + 1e-8))

    def cdist1(a, b):
        return jnp.sum(jnp.abs(a[:, None, :] - b[None, :, :]), axis=-1)

    keep_f = keep.astype(jnp.float32)[None, :]
    cost_bbox = cdist1(out_bbox[:, :4], tgt_bbox[:, :4]) \
        + keep_f * cdist1(out_bbox[:, 4:], tgt_bbox[:, 4:])

    def xyxy(b):
        return jnp.stack([b[:, 0] - 0.5 * b[:, 2], b[:, 1] - 0.5 * b[:, 3],
                          b[:, 0] + 0.5 * b[:, 2], b[:, 1] + 0.5 * b[:, 3]], axis=-1)

    def giou(a, b):
        area_a = (a[:, 2] - a[:, 0]) * (a[:, 3] - a[:, 1])
        area_b = (b[:, 2] - b[:, 0]) * (b[:, 3] - b[:, 1])
        lt = jnp.maximum(a[:, None, :2], b[None, :, :2])
        rb = jnp.minimum(a[:, None, 2:], b[None, :, 2:])
        wh = jnp.maximum(rb - lt, 0.0)
        inter = wh[..., 0] * wh[..., 1]
        union = area_a[:, None] + area_b[None, :] - inter
        iou = inter / union
        lt2 = jnp.minimum(a[:, None, :2], b[None, :, :2])
        rb2 = jnp.maximum(a[:, None, 2:], b[None, :, 2:])
        wh2 = jnp.maximum(rb2 - lt2, 0.0)
        area_c = wh2[..., 0] * wh2[..., 1]
        return iou - (area_c - union) / area_c

    cost_giou = -giou(xyxy(out_bbox[:, :4]), xyxy(tgt_bbox[:, :4])) \
        + keep_f * -giou(xyxy(out_bbox[:, 4:]), xyxy(tgt_bbox[:, 4:]))

    def ce(x, t):
        sp = jnp.log(1.0 + jnp.exp(-jnp.abs(x)))
        pos = jnp.maximum(x, 0.0) - x + sp
        neg = jnp.maximum(x, 0.0) + sp
        return (pos @ t.T + neg @ (1 - t).T) / x.shape[1]

    def dice(x, t):
        s = jax.nn.sigmoid(x)
        num = 2 * (s @ t.T)
        den = s.sum(-1)[:, None] + t.sum(-1)[None, :]
        return 1 - (num + 1) / (den + 1)

    cost_mask = ce(out_m0, tgt_m0) + keep_f * ce(out_m1, tgt_m1)
    cost_dice = dice(out_m0, tgt_m0) + keep_f * dice(out_m1, tgt_m1)
    return cb * cost_bbox + cc * cost_class + cg * cost_giou + cm * cost_mask + cd * cost_dice


# ---------------------------------------------------------------------------
# Main
# ---------------------------------------------------------------------------
if __name__ == "__main__":
    key = jax.random.PRNGKey(0)
    ks = jax.random.split(key, 8)
    B, Q, H, W = 2, 8, 8, 8
    sizes = [3, 5]

    def rand_boxes(k, n):
        k1, k2 = jax.random.split(k)
        centers = jax.random.uniform(k1, (n, 4), minval=0.3, maxval=0.7)
        whs = jax.random.uniform(k2, (n, 4), minval=0.1, maxval=0.4)
        return jnp.stack([centers[:, 0], centers[:, 1], whs[:, 0], whs[:, 1],
                          centers[:, 2], centers[:, 3], whs[:, 2], whs[:, 3]], axis=-1)

    outputs = {
        'pred_logits': jax.random.normal(ks[0], (B, Q, 2), jnp.float32),
        'pred_boxes': rand_boxes(ks[1], B * Q).reshape(B, Q, 8),
        'pred_masks': jax.random.normal(ks[2], (B, Q, 2, H, W), jnp.float32),
    }

    training_method, target_name = 'main', 'cur'
    targets = []
    for b, n in enumerate(sizes):
        kb = jax.random.fold_in(ks[3], b)
        k1, k2, k3 = jax.random.split(kb, 3)
        labels = jnp.stack([jnp.zeros((n,), jnp.int32),
                            jax.random.bernoulli(k1, 0.5, (n,)).astype(jnp.int32)], axis=-1)
        boxes = rand_boxes(k2, n)
        masks = (jax.random.uniform(k3, (n, 2, H, W)) > 0.5).astype(jnp.float32)
        targets.append({training_method: {target_name: {
            'labels': labels, 'boxes': boxes, 'masks': masks, 'empty': False}}})

    # ---- mask-matching path (full kernel with the point reduction axis) ----
    matcher = HungarianMatcherPallas(cost_class=2.0, cost_bbox=5.0, cost_giou=2.0,
                                     cost_mask=2.0, cost_dice=2.0, match_masks=True)
    ind, targets = matcher(outputs, targets, training_method, target_name)

    dbg = matcher._debug
    ref = reference_cost_matrix(dbg['logits'], dbg['out_bbox'], dbg['out_m0'], dbg['out_m1'],
                                dbg['tgt_ids'], dbg['tgt_bbox'], dbg['tgt_m0'], dbg['tgt_m1'],
                                dbg['keep'], dbg['weights'], matcher.focal_alpha,
                                matcher.focal_gamma)
    ref = np.asarray(jax.block_until_ready(ref))
    got = np.asarray(dbg['cost'])
    np.testing.assert_allclose(got, ref, rtol=5e-2, atol=5e-2)
    for (i_idx, j_idx), n in zip(ind, sizes):
        assert len(i_idx) == len(j_idx) == min(Q, n)

    # ---- no-mask path (trace-time specialized, finalize-only kernel) ----
    matcher2 = HungarianMatcherPallas(cost_class=2.0, cost_bbox=5.0, cost_giou=2.0,
                                      match_masks=False)
    ind2, _ = matcher2(outputs, targets, training_method, target_name)
    dbg2 = matcher2._debug
    nq = dbg2['logits'].shape[0]
    mt = dbg2['tgt_ids'].shape[0]
    dummy_o = jnp.zeros((nq, 8), jnp.float32)
    dummy_t = jnp.zeros((mt, 8), jnp.float32)
    ref2 = reference_cost_matrix(dbg2['logits'], dbg2['out_bbox'], dummy_o, dummy_o,
                                 dbg2['tgt_ids'], dbg2['tgt_bbox'], dummy_t, dummy_t,
                                 dbg2['keep'], dbg2['weights'], matcher2.focal_alpha,
                                 matcher2.focal_gamma)
    np.testing.assert_allclose(np.asarray(dbg2['cost']),
                               np.asarray(jax.block_until_ready(ref2)),
                               rtol=5e-2, atol=5e-2)
    for (i_idx, j_idx), n in zip(ind2, sizes):
        assert len(i_idx) == len(j_idx) == min(Q, n)

    print("KERNEL_OK")
</pallas_src>

<mosaic_0001>
module attributes {stable_mosaic.version = 11 : i64} {
  func.func @_cost_kernel_masks(%arg0: i32, %arg1: i32, %arg2: memref<16x16xf32, #tpu.memory_space<vmem>>, %arg3: memref<16x128xbf16, #tpu.memory_space<vmem>>, %arg4: memref<16x128xbf16, #tpu.memory_space<vmem>>, %arg5: memref<16x128xf32, #tpu.memory_space<vmem>>, %arg6: memref<128x128xbf16, #tpu.memory_space<vmem>>, %arg7: memref<128x128xbf16, #tpu.memory_space<vmem>>, %arg8: memref<16x128xf32, #tpu.memory_space<vmem>>, %arg9: memref<16x128xf32, #tpu.memory_space<vmem>>, %arg10: memref<16x128xf32, #tpu.memory_space<vmem>>, %arg11: memref<16x128xf32, #tpu.memory_space<vmem>>, %arg12: memref<16x128xf32, #tpu.memory_space<vmem>>, %arg13: memref<16x1xf32, #tpu.memory_space<vmem>>, %arg14: memref<16x1xf32, #tpu.memory_space<vmem>>) attributes {dimension_semantics = [#tpu.dimension_semantics<parallel>, #tpu.dimension_semantics<arbitrary>], iteration_bounds = array<i64: 1, 1>, scalar_prefetch = 0 : i64, scratch_operands = 6 : i64, tpu.core_type = #tpu.core_type<tc>, window_params = [{transform_indices = @transform_0, window_bounds = array<i64: 16, 16>}, {transform_indices = @transform_1, window_bounds = array<i64: 16, 128>}, {transform_indices = @transform_2, window_bounds = array<i64: 16, 128>}, {pipeline_mode = #tpu.pipeline_mode<synchronous>, transform_indices = @transform_3, window_bounds = array<i64: 16, 128>}, {transform_indices = @transform_4, window_bounds = array<i64: 128, 128>}, {transform_indices = @transform_5, window_bounds = array<i64: 128, 128>}, {transform_indices = @transform_6, window_bounds = array<i64: 16, 128>}]} {
    %c0_i32 = arith.constant 0 : i32
    %0 = arith.cmpi eq, %arg1, %c0_i32 : i32
    %1 = arith.extui %0 : i1 to i32
    %c0_i32_0 = arith.constant 0 : i32
    %2 = arith.cmpi ne, %1, %c0_i32_0 : i32
    scf.if %2 {
      %cst_47 = arith.constant 0.000000e+00 : f32
      %76 = vector.broadcast %cst_47 : f32 to vector<16x128xf32>
      %c0_48 = arith.constant 0 : index
      %c0_49 = arith.constant 0 : index
      %77 = vector.load %arg9[%c0_48, %c0_49] : memref<16x128xf32, #tpu.memory_space<vmem>>, vector<16x128xf32>
      tpu.vector_store %arg9[%c0_48, %c0_49], %76 {strides = array<i32>} : memref<16x128xf32, #tpu.memory_space<vmem>>, vector<16x128xf32>,
      %cst_50 = arith.constant 0.000000e+00 : f32
      %78 = vector.broadcast %cst_50 : f32 to vector<16x128xf32>
      %c0_51 = arith.constant 0 : index
      %c0_52 = arith.constant 0 : index
      %79 = vector.load %arg10[%c0_51, %c0_52] : memref<16x128xf32, #tpu.memory_space<vmem>>, vector<16x128xf32>
      tpu.vector_store %arg10[%c0_51, %c0_52], %78 {strides = array<i32>} : memref<16x128xf32, #tpu.memory_space<vmem>>, vector<16x128xf32>,
      %cst_53 = arith.constant 0.000000e+00 : f32
      %80 = vector.broadcast %cst_53 : f32 to vector<16x128xf32>
      %c0_54 = arith.constant 0 : index
      %c0_55 = arith.constant 0 : index
      %81 = vector.load %arg11[%c0_54, %c0_55] : memref<16x128xf32, #tpu.memory_space<vmem>>, vector<16x128xf32>
      tpu.vector_store %arg11[%c0_54, %c0_55], %80 {strides = array<i32>} : memref<16x128xf32, #tpu.memory_space<vmem>>, vector<16x128xf32>,
      %cst_56 = arith.constant 0.000000e+00 : f32
      %82 = vector.broadcast %cst_56 : f32 to vector<16x128xf32>
      %c0_57 = arith.constant 0 : index
      %c0_58 = arith.constant 0 : index
      %83 = vector.load %arg12[%c0_57, %c0_58] : memref<16x128xf32, #tpu.memory_space<vmem>>, vector<16x128xf32>
      tpu.vector_store %arg12[%c0_57, %c0_58], %82 {strides = array<i32>} : memref<16x128xf32, #tpu.memory_space<vmem>>, vector<16x128xf32>,
      %cst_59 = arith.constant 0.000000e+00 : f32
      %84 = vector.broadcast %cst_59 : f32 to vector<16x1xf32>
      %c0_60 = arith.constant 0 : index
      %c0_61 = arith.constant 0 : index
      %85 = vector.load %arg13[%c0_60, %c0_61] : memref<16x1xf32, #tpu.memory_space<vmem>>, vector<16x1xf32>
      tpu.vector_store %arg13[%c0_60, %c0_61], %84 {strides = array<i32>} : memref<16x1xf32, #tpu.memory_space<vmem>>, vector<16x1xf32>,
      %cst_62 = arith.constant 0.000000e+00 : f32
      %86 = vector.broadcast %cst_62 : f32 to vector<16x1xf32>
      %c0_63 = arith.constant 0 : index
      %c0_64 = arith.constant 0 : index
      %87 = vector.load %arg14[%c0_63, %c0_64] : memref<16x1xf32, #tpu.memory_space<vmem>>, vector<16x1xf32>
      tpu.vector_store %arg14[%c0_63, %c0_64], %86 {strides = array<i32>} : memref<16x1xf32, #tpu.memory_space<vmem>>, vector<16x1xf32>,
    } else {
    }
    %c0 = arith.constant 0 : index
    %c0_1 = arith.constant 0 : index
    %3 = vector.load %arg3[%c0, %c0_1] : memref<16x128xbf16, #tpu.memory_space<vmem>>, vector<16x128xbf16>
    %c0_2 = arith.constant 0 : index
    %c0_3 = arith.constant 0 : index
    %4 = vector.load %arg6[%c0_2, %c0_3] : memref<128x128xbf16, #tpu.memory_space<vmem>>, vector<128x128xbf16>
    %5 = arith.extf %3 : vector<16x128xbf16> to vector<16x128xf32>
    %6 = math.absf %5 : vector<16x128xf32>
    %cst = arith.constant 0.000000e+00 : f32
    %7 = vector.broadcast %cst : f32 to vector<16x128xf32>
    %8 = arith.subf %7, %6 : vector<16x128xf32>
    %9 = math.exp %8 : vector<16x128xf32>
    %cst_4 = arith.constant 1.000000e+00 : f32
    %10 = vector.broadcast %cst_4 : f32 to vector<16x128xf32>
    %11 = arith.addf %10, %9 : vector<16x128xf32>
    %cst_5 = arith.constant 0.000000e+00 : f32
    %12 = vector.broadcast %cst_5 : f32 to vector<16x128xf32>
    %13 = arith.maximumf %5, %12 : vector<16x128xf32>
    %14 = math.log %11 : vector<16x128xf32>
    %15 = arith.addf %13, %14 : vector<16x128xf32>
    %cst_6 = arith.constant 0.000000e+00 : f32
    %16 = vector.broadcast %cst_6 : f32 to vector<16x128xf32>
    %17 = arith.cmpf oge, %5, %16 : vector<16x128xf32>
    %cst_7 = arith.constant 1.000000e+00 : f32
    %18 = vector.broadcast %cst_7 : f32 to vector<16x128xf32>
    %19 = arith.select %17, %18, %9 : vector<16x128xi1>, vector<16x128xf32>
    %20 = tpu.reciprocal %11 {approx = true} : vector<16x128xf32> -> vector<16x128xf32>
    %21 = arith.mulf %19, %20 : vector<16x128xf32>
    %22 = arith.truncf %21 : vector<16x128xf32> to vector<16x128xbf16>
    %23 = tpu.concatenate %3, %22 in 0 : vector<16x128xbf16>, vector<16x128xbf16> -> vector<32x128xbf16>
    %cst_8 = arith.constant dense<0.000000e+00> : vector<32x128xf32>
    %24 = tpu.matmul %23, %4, %cst_8 {dimension_numbers = #tpu.dot_dimension_numbers<[1], [0], [0], [1], [0, 0, 1, 1], [], []>} : vector<32x128xbf16>, vector<128x128xbf16>, vector<32x128xf32> -> vector<32x128xf32>
    %c0_9 = arith.constant 0 : index
    %c0_10 = arith.constant 0 : index
    %25 = vector.load %arg9[%c0_9, %c0_10] : memref<16x128xf32, #tpu.memory_space<vmem>>, vector<16x128xf32>
    %26 = vector.extract_strided_slice %24 {offsets = [0, 0], sizes = [16, 128], strides = [1, 1]} : vector<32x128xf32> to vector<16x128xf32>
    %27 = arith.addf %25, %26 : vector<16x128xf32>
    %c0_11 = arith.constant 0 : index
    %c0_12 = arith.constant 0 : index
    %28 = vector.load %arg9[%c0_11, %c0_12] : memref<16x128xf32, #tpu.memory_space<vmem>>, vector<16x128xf32>
    tpu.vector_store %arg9[%c0_11, %c0_12], %27 {strides = array<i32>} : memref<16x128xf32, #tpu.memory_space<vmem>>, vector<16x128xf32>,
    %c0_13 = arith.constant 0 : index
    %c0_14 = arith.constant 0 : index
    %29 = vector.load %arg11[%c0_13, %c0_14] : memref<16x128xf32, #tpu.memory_space<vmem>>, vector<16x128xf32>
    %30 = vector.extract_strided_slice %24 {offsets = [16, 0], sizes = [16, 128], strides = [1, 1]} : vector<32x128xf32> to vector<16x128xf32>
    %31 = arith.addf %29, %30 : vector<16x128xf32>
    %c0_15 = arith.constant 0 : index
    %c0_16 = arith.constant 0 : index
    %32 = vector.load %arg11[%c0_15, %c0_16] : memref<16x128xf32, #tpu.memory_space<vmem>>, vector<16x128xf32>
    tpu.vector_store %arg11[%c0_15, %c0_16], %31 {strides = array<i32>} : memref<16x128xf32, #tpu.memory_space<vmem>>, vector<16x128xf32>,
    %c0_17 = arith.constant 0 : index
    %c0_18 = arith.constant 0 : index
    %33 = vector.load %arg13[%c0_17, %c0_18] : memref<16x1xf32, #tpu.memory_space<vmem>>, vector<16x1xf32>
    %cst_19 = arith.constant dense<0.000000e+00> : vector<16xf32>
    %34 = vector.multi_reduction <add>, %15, %cst_19 [1] : vector<16x128xf32> to vector<16xf32>
    %35 = vector.shape_cast %34 : vector<16xf32> to vector<16x1xf32>
    %36 = arith.addf %33, %35 : vector<16x1xf32>
    %c0_20 = arith.constant 0 : index
    %c0_21 = arith.constant 0 : index
    %37 = vector.load %arg13[%c0_20, %c0_21] : memref<16x1xf32, #tpu.memory_space<vmem>>, vector<16x1xf32>
    tpu.vector_store %arg13[%c0_20, %c0_21], %36 {strides = array<i32>} : memref<16x1xf32, #tpu.memory_space<vmem>>, vector<16x1xf32>,
    %c0_22 = arith.constant 0 : index
    %c0_23 = arith.constant 0 : index
    %38 = vector.load %arg4[%c0_22, %c0_23] : memref<16x128xbf16, #tpu.memory_space<vmem>>, vector<16x128xbf16>
    %c0_24 = arith.constant 0 : index
    %c0_25 = arith.constant 0 : index
    %39 = vector.load %arg7[%c0_24, %c0_25] : memref<128x128xbf16, #tpu.memory_space<vmem>>, vector<128x128xbf16>
    %40 = arith.extf %38 : vector<16x128xbf16> to vector<16x128xf32>
    %41 = math.absf %40 : vector<16x128xf32>
    %cst_26 = arith.constant 0.000000e+00 : f32
    %42 = vector.broadcast %cst_26 : f32 to vector<16x128xf32>
    %43 = arith.subf %42, %41 : vector<16x128xf32>
    %44 = math.exp %43 : vector<16x128xf32>
    %cst_27 = arith.constant 1.000000e+00 : f32
    %45 = vector.broadcast %cst_27 : f32 to vector<16x128xf32>
    %46 = arith.addf %45, %44 : vector<16x128xf32>
    %cst_28 = arith.constant 0.000000e+00 : f32
    %47 = vector.broadcast %cst_28 : f32 to vector<16x128xf32>
    %48 = arith.maximumf %40, %47 : vector<16x128xf32>
    %49 = math.log %46 : vector<16x128xf32>
    %50 = arith.addf %48, %49 : vector<16x128xf32>
    %cst_29 = arith.constant 0.000000e+00 : f32
    %51 = vector.broadcast %cst_29 : f32 to vector<16x128xf32>
    %52 = arith.cmpf oge, %40, %51 : vector<16x128xf32>
    %cst_30 = arith.constant 1.000000e+00 : f32
    %53 = vector.broadcast %cst_30 : f32 to vector<16x128xf32>
    %54 = arith.select %52, %53, %44 : vector<16x128xi1>, vector<16x128xf32>
    %55 = tpu.reciprocal %46 {approx = true} : vector<16x128xf32> -> vector<16x128xf32>
    %56 = arith.mulf %54, %55 : vector<16x128xf32>
    %57 = arith.truncf %56 : vector<16x128xf32> to vector<16x128xbf16>
    %58 = tpu.concatenate %38, %57 in 0 : vector<16x128xbf16>, vector<16x128xbf16> -> vector<32x128xbf16>
    %cst_31 = arith.constant dense<0.000000e+00> : vector<32x128xf32>
    %59 = tpu.matmul %58, %39, %cst_31 {dimension_numbers = #tpu.dot_dimension_numbers<[1], [0], [0], [1], [0, 0, 1, 1], [], []>} : vector<32x128xbf16>, vector<128x128xbf16>, vector<32x128xf32> -> vector<32x128xf32>
    %c0_32 = arith.constant 0 : index
    %c0_33 = arith.constant 0 : index
    %60 = vector.load %arg10[%c0_32, %c0_33] : memref<16x128xf32, #tpu.memory_space<vmem>>, vector<16x128xf32>
    %61 = vector.extract_strided_slice %59 {offsets = [0, 0], sizes = [16, 128], strides = [1, 1]} : vector<32x128xf32> to vector<16x128xf32>
    %62 = arith.addf %60, %61 : vector<16x128xf32>
    %c0_34 = arith.constant 0 : index
    %c0_35 = arith.constant 0 : index
    %63 = vector.load %arg10[%c0_34, %c0_35] : memref<16x128xf32, #tpu.memory_space<vmem>>, vector<16x128xf32>
    tpu.vector_store %arg10[%c0_34, %c0_35], %62 {strides = array<i32>} : memref<16x128xf32, #tpu.memory_space<vmem>>, vector<16x128xf32>,
    %c0_36 = arith.constant 0 : index
    %c0_37 = arith.constant 0 : index
    %64 = vector.load %arg12[%c0_36, %c0_37] : memref<16x128xf32, #tpu.memory_space<vmem>>, vector<16x128xf32>
    %65 = vector.extract_strided_slice %59 {offsets = [16, 0], sizes = [16, 128], strides = [1, 1]} : vector<32x128xf32> to vector<16x128xf32>
    %66 = arith.addf %64, %65 : vector<16x128xf32>
    %c0_38 = arith.constant 0 : index
    %c0_39 = arith.constant 0 : index
    %67 = vector.load %arg12[%c0_38, %c0_39] : memref<16x128xf32, #tpu.memory_space<vmem>>, vector<16x128xf32>
    tpu.vector_store %arg12[%c0_38, %c0_39], %66 {strides = array<i32>} : memref<16x128xf32, #tpu.memory_space<vmem>>, vector<16x128xf32>,
    %c0_40 = arith.constant 0 : index
    %c0_41 = arith.constant 0 : index
    %68 = vector.load %arg14[%c0_40, %c0_41] : memref<16x1xf32, #tpu.memory_space<vmem>>, vector<16x1xf32>
    %cst_42 = arith.constant dense<0.000000e+00> : vector<16xf32>
    %69 = vector.multi_reduction <add>, %50, %cst_42 [1] : vector<16x128xf32> to vector<16xf32>
    %70 = vector.shape_cast %69 : vector<16xf32> to vector<16x1xf32>
    %71 = arith.addf %68, %70 : vector<16x1xf32>
    %c0_43 = arith.constant 0 : index
    %c0_44 = arith.constant 0 : index
    %72 = vector.load %arg14[%c0_43, %c0_44] : memref<16x1xf32, #tpu.memory_space<vmem>>, vector<16x1xf32>
    tpu.vector_store %arg14[%c0_43, %c0_44], %71 {strides = array<i32>} : memref<16x1xf32, #tpu.memory_space<vmem>>, vector<16x1xf32>,
    %c0_i32_45 = arith.constant 0 : i32
    %73 = arith.cmpi eq, %arg1, %c0_i32_45 : i32
    %74 = arith.extui %73 : i1 to i32
    %c0_i32_46 = arith.constant 0 : i32
    %75 = arith.cmpi ne, %74, %c0_i32_46 : i32
    scf.if %75 {
      %c0_47 = arith.constant 0 : index
      %c0_48 = arith.constant 0 : index
      %76 = vector.load %arg5[%c0_47, %c0_48] : memref<16x128xf32, #tpu.memory_space<vmem>>, vector<16x128xf32>
      %c0_49 = arith.constant 0 : index
      %c0_50 = arith.constant 0 : index
      %77 = vector.load %arg2[%c0_49, %c0_50] : memref<16x16xf32, #tpu.memory_space<vmem>>, vector<16x16xf32>
      %78 = vector.extract_strided_slice %76 {offsets = [0, 0], sizes = [1, 128], strides = [1, 1]} : vector<16x128xf32> to vector<1x128xf32>
      %79 = vector.extract_strided_slice %76 {offsets = [1, 0], sizes = [1, 128], strides = [1, 1]} : vector<16x128xf32> to vector<1x128xf32>
      %80 = vector.extract_strided_slice %76 {offsets = [2, 0], sizes = [8, 128], strides = [1, 1]} : vector<16x128xf32> to vector<8x128xf32>
      %81 = vector.extract_strided_slice %76 {offsets = [10, 0], sizes = [1, 128], strides = [1, 1]} : vector<16x128xf32> to vector<1x128xf32>
      %cst_51 = arith.constant 5.000000e-01 : f32
      %82 = vector.broadcast %cst_51 : f32 to vector<1x128xf32>
      %83 = arith.cmpf ogt, %81, %82 : vector<1x128xf32>
      %84 = vector.extract_strided_slice %77 {offsets = [0, 0], sizes = [16, 1], strides = [1, 1]} : vector<16x16xf32> to vector<16x1xf32>
      %85 = vector.extract_strided_slice %77 {offsets = [0, 1], sizes = [16, 1], strides = [1, 1]} : vector<16x16xf32> to vector<16x1xf32>
      %86 = vector.extract_strided_slice %77 {offsets = [0, 2], sizes = [16, 8], strides = [1, 1]} : vector<16x16xf32> to vector<16x8xf32>
      %87 = arith.subf %85, %84 : vector<16x1xf32>
      %88 = math.exp %87 : vector<16x1xf32>
      %cst_52 = arith.constant 1.000000e+00 : f32
      %89 = vector.broadcast %cst_52 : f32 to vector<16x1xf32>
      %90 = arith.addf %89, %88 : vector<16x1xf32>
      %cst_53 = arith.constant 1.000000e+00 : f32
      %91 = vector.broadcast %cst_53 : f32 to vector<16x1xf32>
      %92 = arith.divf %91, %90 : vector<16x1xf32>
      %cst_54 = arith.constant 1.000000e+00 : f32
      %93 = vector.broadcast %cst_54 : f32 to vector<16x1xf32>
      %94 = arith.subf %93, %92 : vector<16x1xf32>
      %cst_55 = arith.constant 1.000000e+00 : f32
      %95 = vector.broadcast %cst_55 : f32 to vector<16x1xf32>
      %96 = arith.subf %95, %92 : vector<16x1xf32>
      %97 = arith.mulf %96, %96 : vector<16x1xf32>
      %cst_56 = arith.constant 2.500000e-01 : f32
      %98 = vector.broadcast %cst_56 : f32 to vector<16x1xf32>
      %99 = arith.mulf %98, %97 : vector<16x1xf32>
      %cst_57 = arith.constant 9.99999993E-9 : f32
      %100 = vector.broadcast %cst_57 : f32 to vector<16x1xf32>
      %101 = arith.addf %92, %100 : vector<16x1xf32>
      %102 = math.log %101 : vector<16x1xf32>
      %cst_58 = arith.constant 0.000000e+00 : f32
      %103 = vector.broadcast %cst_58 : f32 to vector<16x1xf32>
      %104 = arith.subf %103, %102 : vector<16x1xf32>
      %105 = arith.mulf %99, %104 : vector<16x1xf32>
      %106 = arith.mulf %92, %92 : vector<16x1xf32>
      %cst_59 = arith.constant -7.500000e-01 : f32
      %107 = vector.broadcast %cst_59 : f32 to vector<16x1xf32>
      %108 = arith.mulf %107, %106 : vector<16x1xf32>
      %cst_60 = arith.constant 1.000000e+00 : f32
      %109 = vector.broadcast %cst_60 : f32 to vector<16x1xf32>
      %110 = arith.subf %109, %92 : vector<16x1xf32>
      %cst_61 = arith.constant 9.99999993E-9 : f32
      %111 = vector.broadcast %cst_61 : f32 to vector<16x1xf32>
      %112 = arith.addf %110, %111 : vector<16x1xf32>
      %113 = math.log %112 : vector<16x1xf32>
      %114 = arith.mulf %108, %113 : vector<16x1xf32>
      %cst_62 = arith.constant 1.000000e+00 : f32
      %115 = vector.broadcast %cst_62 : f32 to vector<16x1xf32>
      %116 = arith.subf %115, %94 : vector<16x1xf32>
      %117 = arith.mulf %116, %116 : vector<16x1xf32>
      %cst_63 = arith.constant 2.500000e-01 : f32
      %118 = vector.broadcast %cst_63 : f32 to vector<16x1xf32>
      %119 = arith.mulf %118, %117 : vector<16x1xf32>
      %cst_64 = arith.constant 9.99999993E-9 : f32
      %120 = vector.broadcast %cst_64 : f32 to vector<16x1xf32>
      %121 = arith.addf %94, %120 : vector<16x1xf32>
      %122 = math.log %121 : vector<16x1xf32>
      %cst_65 = arith.constant 0.000000e+00 : f32
      %123 = vector.broadcast %cst_65 : f32 to vector<16x1xf32>
      %124 = arith.subf %123, %122 : vector<16x1xf32>
      %125 = arith.mulf %119, %124 : vector<16x1xf32>
      %126 = arith.mulf %94, %94 : vector<16x1xf32>
      %cst_66 = arith.constant -7.500000e-01 : f32
      %127 = vector.broadcast %cst_66 : f32 to vector<16x1xf32>
      %128 = arith.mulf %127, %126 : vector<16x1xf32>
      %cst_67 = arith.constant 1.000000e+00 : f32
      %129 = vector.broadcast %cst_67 : f32 to vector<16x1xf32>
      %130 = arith.subf %129, %94 : vector<16x1xf32>
      %cst_68 = arith.constant 9.99999993E-9 : f32
      %131 = vector.broadcast %cst_68 : f32 to vector<16x1xf32>
      %132 = arith.addf %130, %131 : vector<16x1xf32>
      %133 = math.log %132 : vector<16x1xf32>
      %134 = arith.mulf %128, %133 : vector<16x1xf32>
      %135 = arith.addf %105, %125 : vector<16x1xf32>
      %136 = arith.subf %114, %105 : vector<16x1xf32>
      %137 = vector.broadcast %136 : vector<16x1xf32> to vector<16x128xf32>
      %138 = vector.broadcast %78 : vector<1x128xf32> to vector<16x128xf32>
      %139 = arith.mulf %137, %138 : vector<16x128xf32>
      %140 = vector.broadcast %135 : vector<16x1xf32> to vector<16x128xf32>
      %141 = arith.addf %140, %139 : vector<16x128xf32>
      %142 = arith.subf %134, %125 : vector<16x1xf32>
      %143 = vector.broadcast %142 : vector<16x1xf32> to vector<16x128xf32>
      %144 = vector.broadcast %79 : vector<1x128xf32> to vector<16x128xf32>
      %145 = arith.mulf %143, %144 : vector<16x128xf32>
      %146 = arith.addf %141, %145 : vector<16x128xf32>
      %cst_69 = arith.constant 2.000000e+00 : f32
      %147 = vector.broadcast %cst_69 : f32 to vector<16x128xf32>
      %148 = arith.mulf %147, %146 : vector<16x128xf32>
      %149 = vector.extract_strided_slice %86 {offsets = [0, 0], sizes = [16, 4], strides = [1, 1]} : vector<16x8xf32> to vector<16x4xf32>
      %150 = vector.extract_strided_slice %80 {offsets = [0, 0], sizes = [4, 128], strides = [1, 1]} : vector<8x128xf32> to vector<4x128xf32>
      %151 = vector.extract_strided_slice %149 {offsets = [0, 0], sizes = [16, 1], strides = [1, 1]} : vector<16x4xf32> to vector<16x1xf32>
      %152 = vector.extract_strided_slice %150 {offsets = [0, 0], sizes = [1, 128], strides = [1, 1]} : vector<4x128xf32> to vector<1x128xf32>
      %153 = vector.broadcast %151 : vector<16x1xf32> to vector<16x128xf32>
      %154 = vector.broadcast %152 : vector<1x128xf32> to vector<16x128xf32>
      %155 = arith.subf %153, %154 : vector<16x128xf32>
      %156 = math.absf %155 : vector<16x128xf32>
      %157 = vector.extract_strided_slice %149 {offsets = [0, 1], sizes = [16, 1], strides = [1, 1]} : vector<16x4xf32> to vector<16x1xf32>
      %158 = vector.extract_strided_slice %150 {offsets = [1, 0], sizes = [1, 128], strides = [1, 1]} : vector<4x128xf32> to vector<1x128xf32>
      %159 = vector.broadcast %157 : vector<16x1xf32> to vector<16x128xf32>
      %160 = vector.broadcast %158 : vector<1x128xf32> to vector<16x128xf32>
      %161 = arith.subf %159, %160 : vector<16x128xf32>
      %162 = math.absf %161 : vector<16x128xf32>
      %163 = arith.addf %156, %162 : vector<16x128xf32>
      %164 = vector.extract_strided_slice %149 {offsets = [0, 2], sizes = [16, 1], strides = [1, 1]} : vector<16x4xf32> to vector<16x1xf32>
      %165 = vector.extract_strided_slice %150 {offsets = [2, 0], sizes = [1, 128], strides = [1, 1]} : vector<4x128xf32> to vector<1x128xf32>
      %166 = vector.broadcast %164 : vector<16x1xf32> to vector<16x128xf32>
      %167 = vector.broadcast %165 : vector<1x128xf32> to vector<16x128xf32>
      %168 = arith.subf %166, %167 : vector<16x128xf32>
      %169 = math.absf %168 : vector<16x128xf32>
      %170 = arith.addf %163, %169 : vector<16x128xf32>
      %171 = vector.extract_strided_slice %149 {offsets = [0, 3], sizes = [16, 1], strides = [1, 1]} : vector<16x4xf32> to vector<16x1xf32>
      %172 = vector.extract_strided_slice %150 {offsets = [3, 0], sizes = [1, 128], strides = [1, 1]} : vector<4x128xf32> to vector<1x128xf32>
      %173 = vector.broadcast %171 : vector<16x1xf32> to vector<16x128xf32>
      %174 = vector.broadcast %172 : vector<1x128xf32> to vector<16x128xf32>
      %175 = arith.subf %173, %174 : vector<16x128xf32>
      %176 = math.absf %175 : vector<16x128xf32>
      %177 = arith.addf %170, %176 : vector<16x128xf32>
      %cst_70 = arith.constant 5.000000e+00 : f32
      %178 = vector.broadcast %cst_70 : f32 to vector<16x128xf32>
      %179 = arith.mulf %178, %177 : vector<16x128xf32>
      %180 = arith.addf %148, %179 : vector<16x128xf32>
      %181 = vector.extract_strided_slice %86 {offsets = [0, 0], sizes = [16, 4], strides = [1, 1]} : vector<16x8xf32> to vector<16x4xf32>
      %182 = vector.extract_strided_slice %80 {offsets = [0, 0], sizes = [4, 128], strides = [1, 1]} : vector<8x128xf32> to vector<4x128xf32>
      %183 = vector.extract_strided_slice %181 {offsets = [0, 0], sizes = [16, 1], strides = [1, 1]} : vector<16x4xf32> to vector<16x1xf32>
      %184 = vector.extract_strided_slice %181 {offsets = [0, 2], sizes = [16, 1], strides = [1, 1]} : vector<16x4xf32> to vector<16x1xf32>
      %cst_71 = arith.constant 5.000000e-01 : f32
      %185 = vector.broadcast %cst_71 : f32 to vector<16x1xf32>
      %186 = arith.mulf %185, %184 : vector<16x1xf32>
      %187 = arith.subf %183, %186 : vector<16x1xf32>
      %188 = vector.extract_strided_slice %181 {offsets = [0, 1], sizes = [16, 1], strides = [1, 1]} : vector<16x4xf32> to vector<16x1xf32>
      %189 = vector.extract_strided_slice %181 {offsets = [0, 3], sizes = [16, 1], strides = [1, 1]} : vector<16x4xf32> to vector<16x1xf32>
      %cst_72 = arith.constant 5.000000e-01 : f32
      %190 = vector.broadcast %cst_72 : f32 to vector<16x1xf32>
      %191 = arith.mulf %190, %189 : vector<16x1xf32>
      %192 = arith.subf %188, %191 : vector<16x1xf32>
      %193 = vector.extract_strided_slice %181 {offsets = [0, 0], sizes = [16, 1], strides = [1, 1]} : vector<16x4xf32> to vector<16x1xf32>
      %194 = vector.extract_strided_slice %181 {offsets = [0, 2], sizes = [16, 1], strides = [1, 1]} : vector<16x4xf32> to vector<16x1xf32>
      %cst_73 = arith.constant 5.000000e-01 : f32
      %195 = vector.broadcast %cst_73 : f32 to vector<16x1xf32>
      %196 = arith.mulf %195, %194 : vector<16x1xf32>
      %197 = arith.addf %193, %196 : vector<16x1xf32>
      %198 = vector.extract_strided_slice %181 {offsets = [0, 1], sizes = [16, 1], strides = [1, 1]} : vector<16x4xf32> to vector<16x1xf32>
      %199 = vector.extract_strided_slice %181 {offsets = [0, 3], sizes = [16, 1], strides = [1, 1]} : vector<16x4xf32> to vector<16x1xf32>
      %cst_74 = arith.constant 5.000000e-01 : f32
      %200 = vector.broadcast %cst_74 : f32 to vector<16x1xf32>
      %201 = arith.mulf %200, %199 : vector<16x1xf32>
      %202 = arith.addf %198, %201 : vector<16x1xf32>
      %203 = vector.extract_strided_slice %182 {offsets = [0, 0], sizes = [1, 128], strides = [1, 1]} : vector<4x128xf32> to vector<1x128xf32>
      %204 = vector.extract_strided_slice %182 {offsets = [2, 0], sizes = [1, 128], strides = [1, 1]} : vector<4x128xf32> to vector<1x128xf32>
      %cst_75 = arith.constant 5.000000e-01 : f32
      %205 = vector.broadcast %cst_75 : f32 to vector<1x128xf32>
      %206 = arith.mulf %205, %204 : vector<1x128xf32>
      %207 = arith.subf %203, %206 : vector<1x128xf32>
      %208 = vector.extract_strided_slice %182 {offsets = [1, 0], sizes = [1, 128], strides = [1, 1]} : vector<4x128xf32> to vector<1x128xf32>
      %209 = vector.extract_strided_slice %182 {offsets = [3, 0], sizes = [1, 128], strides = [1, 1]} : vector<4x128xf32> to vector<1x128xf32>
      %cst_76 = arith.constant 5.000000e-01 : f32
      %210 = vector.broadcast %cst_76 : f32 to vector<1x128xf32>
      %211 = arith.mulf %210, %209 : vector<1x128xf32>
      %212 = arith.subf %208, %211 : vector<1x128xf32>
      %213 = vector.extract_strided_slice %182 {offsets = [0, 0], sizes = [1, 128], strides = [1, 1]} : vector<4x128xf32> to vector<1x128xf32>
      %214 = vector.extract_strided_slice %182 {offsets = [2, 0], sizes = [1, 128], strides = [1, 1]} : vector<4x128xf32> to vector<1x128xf32>
      %cst_77 = arith.constant 5.000000e-01 : f32
      %215 = vector.broadcast %cst_77 : f32 to vector<1x128xf32>
      %216 = arith.mulf %215, %214 : vector<1x128xf32>
      %217 = arith.addf %213, %216 : vector<1x128xf32>
      %218 = vector.extract_strided_slice %182 {offsets = [1, 0], sizes = [1, 128], strides = [1, 1]} : vector<4x128xf32> to vector<1x128xf32>
      %219 = vector.extract_strided_slice %182 {offsets = [3, 0], sizes = [1, 128], strides = [1, 1]} : vector<4x128xf32> to vector<1x128xf32>
      %cst_78 = arith.constant 5.000000e-01 : f32
      %220 = vector.broadcast %cst_78 : f32 to vector<1x128xf32>
      %221 = arith.mulf %220, %219 : vector<1x128xf32>
      %222 = arith.addf %218, %221 : vector<1x128xf32>
      %223 = arith.subf %197, %187 : vector<16x1xf32>
      %224 = arith.subf %202, %192 : vector<16x1xf32>
      %225 = arith.mulf %223, %224 : vector<16x1xf32>
      %226 = arith.subf %217, %207 : vector<1x128xf32>
      %227 = arith.subf %222, %212 : vector<1x128xf32>
      %228 = arith.mulf %226, %227 : vector<1x128xf32>
      %229 = vector.broadcast %197 : vector<16x1xf32> to vector<16x128xf32>
      %230 = vector.broadcast %217 : vector<1x128xf32> to vector<16x128xf32>
      %231 = arith.minimumf %229, %230 : vector<16x128xf32>
      %232 = vector.broadcast %187 : vector<16x1xf32> to vector<16x128xf32>
      %233 = vector.broadcast %207 : vector<1x128xf32> to vector<16x128xf32>
      %234 = arith.maximumf %232, %233 : vector<16x128xf32>
      %235 = arith.subf %231, %234 : vector<16x128xf32>
      %cst_79 = arith.constant 0.000000e+00 : f32
      %236 = vector.broadcast %cst_79 : f32 to vector<16x128xf32>
      %237 = arith.maximumf %235, %236 : vector<16x128xf32>
      %238 = vector.broadcast %202 : vector<16x1xf32> to vector<16x128xf32>
      %239 = vector.broadcast %222 : vector<1x128xf32> to vector<16x128xf32>
      %240 = arith.minimumf %238, %239 : vector<16x128xf32>
      %241 = vector.broadcast %192 : vector<16x1xf32> to vector<16x128xf32>
      %242 = vector.broadcast %212 : vector<1x128xf32> to vector<16x128xf32>
      %243 = arith.maximumf %241, %242 : vector<16x128xf32>
      %244 = arith.subf %240, %243 : vector<16x128xf32>
      %cst_80 = arith.constant 0.000000e+00 : f32
      %245 = vector.broadcast %cst_80 : f32 to vector<16x128xf32>
      %246 = arith.maximumf %244, %245 : vector<16x128xf32>
      %247 = arith.mulf %237, %246 : vector<16x128xf32>
      %248 = vector.broadcast %225 : vector<16x1xf32> to vector<16x128xf32>
      %249 = vector.broadcast %228 : vector<1x128xf32> to vector<16x128xf32>
      %250 = arith.addf %248, %249 : vector<16x128xf32>
      %251 = arith.subf %250, %247 : vector<16x128xf32>
      %cst_81 = arith.constant 9.99999996E-13 : f32
      %252 = vector.broadcast %cst_81 : f32 to vector<16x128xf32>
      %253 = arith.maximumf %251, %252 : vector<16x128xf32>
      %254 = arith.divf %247, %253 : vector<16x128xf32>
      %255 = vector.broadcast %197 : vector<16x1xf32> to vector<16x128xf32>
      %256 = vector.broadcast %217 : vector<1x128xf32> to vector<16x128xf32>
      %257 = arith.maximumf %255, %256 : vector<16x128xf32>
      %258 = vector.broadcast %187 : vector<16x1xf32> to vector<16x128xf32>
      %259 = vector.broadcast %207 : vector<1x128xf32> to vector<16x128xf32>
      %260 = arith.minimumf %258, %259 : vector<16x128xf32>
      %261 = arith.subf %257, %260 : vector<16x128xf32>
      %cst_82 = arith.constant 0.000000e+00 : f32
      %262 = vector.broadcast %cst_82 : f32 to vector<16x128xf32>
      %263 = arith.maximumf %261, %262 : vector<16x128xf32>
      %264 = vector.broadcast %202 : vector<16x1xf32> to vector<16x128xf32>
      %265 = vector.broadcast %222 : vector<1x128xf32> to vector<16x128xf32>
      %266 = arith.maximumf %264, %265 : vector<16x128xf32>
      %267 = vector.broadcast %192 : vector<16x1xf32> to vector<16x128xf32>
      %268 = vector.broadcast %212 : vector<1x128xf32> to vector<16x128xf32>
      %269 = arith.minimumf %267, %268 : vector<16x128xf32>
      %270 = arith.subf %266, %269 : vector<16x128xf32>
      %cst_83 = arith.constant 0.000000e+00 : f32
      %271 = vector.broadcast %cst_83 : f32 to vector<16x128xf32>
      %272 = arith.maximumf %270, %271 : vector<16x128xf32>
      %273 = arith.mulf %263, %272 : vector<16x128xf32>
      %274 = arith.subf %273, %251 : vector<16x128xf32>
      %cst_84 = arith.constant 9.99999996E-13 : f32
      %275 = vector.broadcast %cst_84 : f32 to vector<16x128xf32>
      %276 = arith.maximumf %273, %275 : vector<16x128xf32>
      %277 = arith.divf %274, %276 : vector<16x128xf32>
      %278 = arith.subf %254, %277 : vector<16x128xf32>
      %cst_85 = arith.constant 0.000000e+00 : f32
      %279 = vector.broadcast %cst_85 : f32 to vector<16x128xf32>
      %280 = arith.subf %279, %278 : vector<16x128xf32>
      %cst_86 = arith.constant 2.000000e+00 : f32
      %281 = vector.broadcast %cst_86 : f32 to vector<16x128xf32>
      %282 = arith.mulf %281, %280 : vector<16x128xf32>
      %283 = arith.addf %180, %282 : vector<16x128xf32>
      %284 = vector.extract_strided_slice %86 {offsets = [0, 4], sizes = [16, 4], strides = [1, 1]} : vector<16x8xf32> to vector<16x4xf32>
      %285 = vector.extract_strided_slice %80 {offsets = [4, 0], sizes = [4, 128], strides = [1, 1]} : vector<8x128xf32> to vector<4x128xf32>
      %286 = vector.extract_strided_slice %284 {offsets = [0, 0], sizes = [16, 1], strides = [1, 1]} : vector<16x4xf32> to vector<16x1xf32>
      %287 = vector.extract_strided_slice %285 {offsets = [0, 0], sizes = [1, 128], strides = [1, 1]} : vector<4x128xf32> to vector<1x128xf32>
      %288 = vector.broadcast %286 : vector<16x1xf32> to vector<16x128xf32>
      %289 = vector.broadcast %287 : vector<1x128xf32> to vector<16x128xf32>
      %290 = arith.subf %288, %289 : vector<16x128xf32>
      %291 = math.absf %290 : vector<16x128xf32>
      %292 = vector.extract_strided_slice %284 {offsets = [0, 1], sizes = [16, 1], strides = [1, 1]} : vector<16x4xf32> to vector<16x1xf32>
      %293 = vector.extract_strided_slice %285 {offsets = [1, 0], sizes = [1, 128], strides = [1, 1]} : vector<4x128xf32> to vector<1x128xf32>
      %294 = vector.broadcast %292 : vector<16x1xf32> to vector<16x128xf32>
      %295 = vector.broadcast %293 : vector<1x128xf32> to vector<16x128xf32>
      %296 = arith.subf %294, %295 : vector<16x128xf32>
      %297 = math.absf %296 : vector<16x128xf32>
      %298 = arith.addf %291, %297 : vector<16x128xf32>
      %299 = vector.extract_strided_slice %284 {offsets = [0, 2], sizes = [16, 1], strides = [1, 1]} : vector<16x4xf32> to vector<16x1xf32>
      %300 = vector.extract_strided_slice %285 {offsets = [2, 0], sizes = [1, 128], strides = [1, 1]} : vector<4x128xf32> to vector<1x128xf32>
      %301 = vector.broadcast %299 : vector<16x1xf32> to vector<16x128xf32>
      %302 = vector.broadcast %300 : vector<1x128xf32> to vector<16x128xf32>
      %303 = arith.subf %301, %302 : vector<16x128xf32>
      %304 = math.absf %303 : vector<16x128xf32>
      %305 = arith.addf %298, %304 : vector<16x128xf32>
      %306 = vector.extract_strided_slice %284 {offsets = [0, 3], sizes = [16, 1], strides = [1, 1]} : vector<16x4xf32> to vector<16x1xf32>
      %307 = vector.extract_strided_slice %285 {offsets = [3, 0], sizes = [1, 128], strides = [1, 1]} : vector<4x128xf32> to vector<1x128xf32>
      %308 = vector.broadcast %306 : vector<16x1xf32> to vector<16x128xf32>
      %309 = vector.broadcast %307 : vector<1x128xf32> to vector<16x128xf32>
      %310 = arith.subf %308, %309 : vector<16x128xf32>
      %311 = math.absf %310 : vector<16x128xf32>
      %312 = arith.addf %305, %311 : vector<16x128xf32>
      %cst_87 = arith.constant 5.000000e+00 : f32
      %313 = vector.broadcast %cst_87 : f32 to vector<16x128xf32>
      %314 = arith.mulf %313, %312 : vector<16x128xf32>
      %315 = vector.extract_strided_slice %86 {offsets = [0, 4], sizes = [16, 4], strides = [1, 1]} : vector<16x8xf32> to vector<16x4xf32>
      %316 = vector.extract_strided_slice %80 {offsets = [4, 0], sizes = [4, 128], strides = [1, 1]} : vector<8x128xf32> to vector<4x128xf32>
      %317 = vector.extract_strided_slice %315 {offsets = [0, 0], sizes = [16, 1], strides = [1, 1]} : vector<16x4xf32> to vector<16x1xf32>
      %318 = vector.extract_strided_slice %315 {offsets = [0, 2], sizes = [16, 1], strides = [1, 1]} : vector<16x4xf32> to vector<16x1xf32>
      %cst_88 = arith.constant 5.000000e-01 : f32
      %319 = vector.broadcast %cst_88 : f32 to vector<16x1xf32>
      %320 = arith.mulf %319, %318 : vector<16x1xf32>
      %321 = arith.subf %317, %320 : vector<16x1xf32>
      %322 = vector.extract_strided_slice %315 {offsets = [0, 1], sizes = [16, 1], strides = [1, 1]} : vector<16x4xf32> to vector<16x1xf32>
      %323 = vector.extract_strided_slice %315 {offsets = [0, 3], sizes = [16, 1], strides = [1, 1]} : vector<16x4xf32> to vector<16x1xf32>
      %cst_89 = arith.constant 5.000000e-01 : f32
      %324 = vector.broadcast %cst_89 : f32 to vector<16x1xf32>
      %325 = arith.mulf %324, %323 : vector<16x1xf32>
      %326 = arith.subf %322, %325 : vector<16x1xf32>
      %327 = vector.extract_strided_slice %315 {offsets = [0, 0], sizes = [16, 1], strides = [1, 1]} : vector<16x4xf32> to vector<16x1xf32>
      %328 = vector.extract_strided_slice %315 {offsets = [0, 2], sizes = [16, 1], strides = [1, 1]} : vector<16x4xf32> to vector<16x1xf32>
      %cst_90 = arith.constant 5.000000e-01 : f32
      %329 = vector.broadcast %cst_90 : f32 to vector<16x1xf32>
      %330 = arith.mulf %329, %328 : vector<16x1xf32>
      %331 = arith.addf %327, %330 : vector<16x1xf32>
      %332 = vector.extract_strided_slice %315 {offsets = [0, 1], sizes = [16, 1], strides = [1, 1]} : vector<16x4xf32> to vector<16x1xf32>
      %333 = vector.extract_strided_slice %315 {offsets = [0, 3], sizes = [16, 1], strides = [1, 1]} : vector<16x4xf32> to vector<16x1xf32>
      %cst_91 = arith.constant 5.000000e-01 : f32
      %334 = vector.broadcast %cst_91 : f32 to vector<16x1xf32>
      %335 = arith.mulf %334, %333 : vector<16x1xf32>
      %336 = arith.addf %332, %335 : vector<16x1xf32>
      %337 = vector.extract_strided_slice %316 {offsets = [0, 0], sizes = [1, 128], strides = [1, 1]} : vector<4x128xf32> to vector<1x128xf32>
      %338 = vector.extract_strided_slice %316 {offsets = [2, 0], sizes = [1, 128], strides = [1, 1]} : vector<4x128xf32> to vector<1x128xf32>
      %cst_92 = arith.constant 5.000000e-01 : f32
      %339 = vector.broadcast %cst_92 : f32 to vector<1x128xf32>
      %340 = arith.mulf %339, %338 : vector<1x128xf32>
      %341 = arith.subf %337, %340 : vector<1x128xf32>
      %342 = vector.extract_strided_slice %316 {offsets = [1, 0], sizes = [1, 128], strides = [1, 1]} : vector<4x128xf32> to vector<1x128xf32>
      %343 = vector.extract_strided_slice %316 {offsets = [3, 0], sizes = [1, 128], strides = [1, 1]} : vector<4x128xf32> to vector<1x128xf32>
      %cst_93 = arith.constant 5.000000e-01 : f32
      %344 = vector.broadcast %cst_93 : f32 to vector<1x128xf32>
      %345 = arith.mulf %344, %343 : vector<1x128xf32>
      %346 = arith.subf %342, %345 : vector<1x128xf32>
      %347 = vector.extract_strided_slice %316 {offsets = [0, 0], sizes = [1, 128], strides = [1, 1]} : vector<4x128xf32> to vector<1x128xf32>
      %348 = vector.extract_strided_slice %316 {offsets = [2, 0], sizes = [1, 128], strides = [1, 1]} : vector<4x128xf32> to vector<1x128xf32>
      %cst_94 = arith.constant 5.000000e-01 : f32
      %349 = vector.broadcast %cst_94 : f32 to vector<1x128xf32>
      %350 = arith.mulf %349, %348 : vector<1x128xf32>
      %351 = arith.addf %347, %350 : vector<1x128xf32>
      %352 = vector.extract_strided_slice %316 {offsets = [1, 0], sizes = [1, 128], strides = [1, 1]} : vector<4x128xf32> to vector<1x128xf32>
      %353 = vector.extract_strided_slice %316 {offsets = [3, 0], sizes = [1, 128], strides = [1, 1]} : vector<4x128xf32> to vector<1x128xf32>
      %cst_95 = arith.constant 5.000000e-01 : f32
      %354 = vector.broadcast %cst_95 : f32 to vector<1x128xf32>
      %355 = arith.mulf %354, %353 : vector<1x128xf32>
      %356 = arith.addf %352, %355 : vector<1x128xf32>
      %357 = arith.subf %331, %321 : vector<16x1xf32>
      %358 = arith.subf %336, %326 : vector<16x1xf32>
      %359 = arith.mulf %357, %358 : vector<16x1xf32>
      %360 = arith.subf %351, %341 : vector<1x128xf32>
      %361 = arith.subf %356, %346 : vector<1x128xf32>
      %362 = arith.mulf %360, %361 : vector<1x128xf32>
      %363 = vector.broadcast %331 : vector<16x1xf32> to vector<16x128xf32>
      %364 = vector.broadcast %351 : vector<1x128xf32> to vector<16x128xf32>
      %365 = arith.minimumf %363, %364 : vector<16x128xf32>
      %366 = vector.broadcast %321 : vector<16x1xf32> to vector<16x128xf32>
      %367 = vector.broadcast %341 : vector<1x128xf32> to vector<16x128xf32>
      %368 = arith.maximumf %366, %367 : vector<16x128xf32>
      %369 = arith.subf %365, %368 : vector<16x128xf32>
      %cst_96 = arith.constant 0.000000e+00 : f32
      %370 = vector.broadcast %cst_96 : f32 to vector<16x128xf32>
      %371 = arith.maximumf %369, %370 : vector<16x128xf32>
      %372 = vector.broadcast %336 : vector<16x1xf32> to vector<16x128xf32>
      %373 = vector.broadcast %356 : vector<1x128xf32> to vector<16x128xf32>
      %374 = arith.minimumf %372, %373 : vector<16x128xf32>
      %375 = vector.broadcast %326 : vector<16x1xf32> to vector<16x128xf32>
      %376 = vector.broadcast %346 : vector<1x128xf32> to vector<16x128xf32>
      %377 = arith.maximumf %375, %376 : vector<16x128xf32>
      %378 = arith.subf %374, %377 : vector<16x128xf32>
      %cst_97 = arith.constant 0.000000e+00 : f32
      %379 = vector.broadcast %cst_97 : f32 to vector<16x128xf32>
      %380 = arith.maximumf %378, %379 : vector<16x128xf32>
      %381 = arith.mulf %371, %380 : vector<16x128xf32>
      %382 = vector.broadcast %359 : vector<16x1xf32> to vector<16x128xf32>
      %383 = vector.broadcast %362 : vector<1x128xf32> to vector<16x128xf32>
      %384 = arith.addf %382, %383 : vector<16x128xf32>
      %385 = arith.subf %384, %381 : vector<16x128xf32>
      %cst_98 = arith.constant 9.99999996E-13 : f32
      %386 = vector.broadcast %cst_98 : f32 to vector<16x128xf32>
      %387 = arith.maximumf %385, %386 : vector<16x128xf32>
      %388 = arith.divf %381, %387 : vector<16x128xf32>
      %389 = vector.broadcast %331 : vector<16x1xf32> to vector<16x128xf32>
      %390 = vector.broadcast %351 : vector<1x128xf32> to vector<16x128xf32>
      %391 = arith.maximumf %389, %390 : vector<16x128xf32>
      %392 = vector.broadcast %321 : vector<16x1xf32> to vector<16x128xf32>
      %393 = vector.broadcast %341 : vector<1x128xf32> to vector<16x128xf32>
      %394 = arith.minimumf %392, %393 : vector<16x128xf32>
      %395 = arith.subf %391, %394 : vector<16x128xf32>
      %cst_99 = arith.constant 0.000000e+00 : f32
      %396 = vector.broadcast %cst_99 : f32 to vector<16x128xf32>
      %397 = arith.maximumf %395, %396 : vector<16x128xf32>
      %398 = vector.broadcast %336 : vector<16x1xf32> to vector<16x128xf32>
      %399 = vector.broadcast %356 : vector<1x128xf32> to vector<16x128xf32>
      %400 = arith.maximumf %398, %399 : vector<16x128xf32>
      %401 = vector.broadcast %326 : vector<16x1xf32> to vector<16x128xf32>
      %402 = vector.broadcast %346 : vector<1x128xf32> to vector<16x128xf32>
      %403 = arith.minimumf %401, %402 : vector<16x128xf32>
      %404 = arith.subf %400, %403 : vector<16x128xf32>
      %cst_100 = arith.constant 0.000000e+00 : f32
      %405 = vector.broadcast %cst_100 : f32 to vector<16x128xf32>
      %406 = arith.maximumf %404, %405 : vector<16x128xf32>
      %407 = arith.mulf %397, %406 : vector<16x128xf32>
      %408 = arith.subf %407, %385 : vector<16x128xf32>
      %cst_101 = arith.constant 9.99999996E-13 : f32
      %409 = vector.broadcast %cst_101 : f32 to vector<16x128xf32>
      %410 = arith.maximumf %407, %409 : vector<16x128xf32>
      %411 = arith.divf %408, %410 : vector<16x128xf32>
      %412 = arith.subf %388, %411 : vector<16x128xf32>
      %cst_102 = arith.constant 0.000000e+00 : f32
      %413 = vector.broadcast %cst_102 : f32 to vector<16x128xf32>
      %414 = arith.subf %413, %412 : vector<16x128xf32>
      %cst_103 = arith.constant 2.000000e+00 : f32
      %415 = vector.broadcast %cst_103 : f32 to vector<16x128xf32>
      %416 = arith.mulf %415, %414 : vector<16x128xf32>
      %417 = arith.addf %314, %416 : vector<16x128xf32>
      %cst_104 = arith.constant 0.000000e+00 : f32
      %418 = vector.shape_cast %83 : vector<1x128xi1> to vector<1x128xi1>
      %419 = vector.broadcast %418 : vector<1x128xi1> to vector<16x128xi1>
      %420 = vector.broadcast %cst_104 : f32 to vector<16x128xf32>
      %421 = arith.select %419, %417, %420 : vector<16x128xi1>, vector<16x128xf32>
      %422 = arith.addf %283, %421 : vector<16x128xf32>
      %423 = vector.extract_strided_slice %76 {offsets = [11, 0], sizes = [1, 128], strides = [1, 1]} : vector<16x128xf32> to vector<1x128xf32>
      %424 = vector.extract_strided_slice %76 {offsets = [12, 0], sizes = [1, 128], strides = [1, 1]} : vector<16x128xf32> to vector<1x128xf32>
      %c0_105 = arith.constant 0 : index
      %c0_106 = arith.constant 0 : index
      %425 = vector.load %arg11[%c0_105, %c0_106] : memref<16x128xf32, #tpu.memory_space<vmem>>, vector<16x128xf32>
      %426 = vector.extract_strided_slice %425 {offsets = [0, 8], sizes = [16, 1], strides = [1, 1]} : vector<16x128xf32> to vector<16x1xf32>
      %c0_107 = arith.constant 0 : index
      %c0_108 = arith.constant 0 : index
      %427 = vector.load %arg13[%c0_107, %c0_108] : memref<16x1xf32, #tpu.memory_space<vmem>>, vector<16x1xf32>
      %c0_109 = arith.constant 0 : index
      %c0_110 = arith.constant 0 : index
      %428 = vector.load %arg9[%c0_109, %c0_110] : memref<16x128xf32, #tpu.memory_space<vmem>>, vector<16x128xf32>
      %429 = vector.broadcast %427 : vector<16x1xf32> to vector<16x128xf32>
      %430 = arith.subf %429, %428 : vector<16x128xf32>
      %cst_111 = arith.constant 1.562500e-02 : f32
      %431 = vector.broadcast %cst_111 : f32 to vector<16x128xf32>
      %432 = arith.mulf %430, %431 : vector<16x128xf32>
      %cst_112 = arith.constant 2.000000e+00 : f32
      %433 = vector.broadcast %cst_112 : f32 to vector<16x128xf32>
      %434 = arith.mulf %433, %432 : vector<16x128xf32>
      %435 = arith.addf %422, %434 : vector<16x128xf32>
      %cst_113 = arith.constant 2.000000e+00 : f32
      %436 = vector.broadcast %cst_113 : f32 to vector<16x128xf32>
      %437 = arith.mulf %436, %425 : vector<16x128xf32>
      %cst_114 = arith.constant 1.000000e+00 : f32
      %438 = vector.broadcast %cst_114 : f32 to vector<16x128xf32>
      %439 = arith.addf %437, %438 : vector<16x128xf32>
      %440 = vector.broadcast %426 : vector<16x1xf32> to vector<16x128xf32>
      %441 = vector.broadcast %423 : vector<1x128xf32> to vector<16x128xf32>
      %442 = arith.addf %440, %441 : vector<16x128xf32>
      %cst_115 = arith.constant 1.000000e+00 : f32
      %443 = vector.broadcast %cst_115 : f32 to vector<16x128xf32>
      %444 = arith.addf %442, %443 : vector<16x128xf32>
      %445 = arith.divf %439, %444 : vector<16x128xf32>
      %cst_116 = arith.constant 1.000000e+00 : f32
      %446 = vector.broadcast %cst_116 : f32 to vector<16x128xf32>
      %447 = arith.subf %446, %445 : vector<16x128xf32>
      %cst_117 = arith.constant 2.000000e+00 : f32
      %448 = vector.broadcast %cst_117 : f32 to vector<16x128xf32>
      %449 = arith.mulf %448, %447 : vector<16x128xf32>
      %450 = arith.addf %435, %449 : vector<16x128xf32>
      %c0_118 = arith.constant 0 : index
      %c0_119 = arith.constant 0 : index
      %451 = vector.load %arg12[%c0_118, %c0_119] : memref<16x128xf32, #tpu.memory_space<vmem>>, vector<16x128xf32>
      %452 = vector.extract_strided_slice %451 {offsets = [0, 8], sizes = [16, 1], strides = [1, 1]} : vector<16x128xf32> to vector<16x1xf32>
      %c0_120 = arith.constant 0 : index
      %c0_121 = arith.constant 0 : index
      %453 = vector.load %arg14[%c0_120, %c0_121] : memref<16x1xf32, #tpu.memory_space<vmem>>, vector<16x1xf32>
      %c0_122 = arith.constant 0 : index
      %c0_123 = arith.constant 0 : index
      %454 = vector.load %arg10[%c0_122, %c0_123] : memref<16x128xf32, #tpu.memory_space<vmem>>, vector<16x128xf32>
      %455 = vector.broadcast %453 : vector<16x1xf32> to vector<16x128xf32>
      %456 = arith.subf %455, %454 : vector<16x128xf32>
      %cst_124 = arith.constant 1.562500e-02 : f32
      %457 = vector.broadcast %cst_124 : f32 to vector<16x128xf32>
      %458 = arith.mulf %456, %457 : vector<16x128xf32>
      %cst_125 = arith.constant 2.000000e+00 : f32
      %459 = vector.broadcast %cst_125 : f32 to vector<16x128xf32>
      %460 = arith.mulf %459, %451 : vector<16x128xf32>
      %cst_126 = arith.constant 1.000000e+00 : f32
      %461 = vector.broadcast %cst_126 : f32 to vector<16x128xf32>
      %462 = arith.addf %460, %461 : vector<16x128xf32>
      %463 = vector.broadcast %452 : vector<16x1xf32> to vector<16x128xf32>
      %464 = vector.broadcast %424 : vector<1x128xf32> to vector<16x128xf32>
      %465 = arith.addf %463, %464 : vector<16x128xf32>
      %cst_127 = arith.constant 1.000000e+00 : f32
      %466 = vector.broadcast %cst_127 : f32 to vector<16x128xf32>
      %467 = arith.addf %465, %466 : vector<16x128xf32>
      %468 = arith.divf %462, %467 : vector<16x128xf32>
      %cst_128 = arith.constant 1.000000e+00 : f32
      %469 = vector.broadcast %cst_128 : f32 to vector<16x128xf32>
      %470 = arith.subf %469, %468 : vector<16x128xf32>
      %cst_129 = arith.constant 2.000000e+00 : f32
      %471 = vector.broadcast %cst_129 : f32 to vector<16x128xf32>
      %472 = arith.mulf %471, %458 : vector<16x128xf32>
      %cst_130 = arith.constant 2.000000e+00 : f32
      %473 = vector.broadcast %cst_130 : f32 to vector<16x128xf32>
      %474 = arith.mulf %473, %470 : vector<16x128xf32>
      %475 = arith.addf %472, %474 : vector<16x128xf32>
      %cst_131 = arith.constant 0.000000e+00 : f32
      %476 = vector.shape_cast %83 : vector<1x128xi1> to vector<1x128xi1>
      %477 = vector.broadcast %476 : vector<1x128xi1> to vector<16x128xi1>
      %478 = vector.broadcast %cst_131 : f32 to vector<16x128xf32>
      %479 = arith.select %477, %475, %478 : vector<16x128xi1>, vector<16x128xf32>
      %480 = arith.addf %450, %479 : vector<16x128xf32>
      %c0_132 = arith.constant 0 : index
      %c0_133 = arith.constant 0 : index
      %481 = vector.load %arg8[%c0_132, %c0_133] : memref<16x128xf32, #tpu.memory_space<vmem>>, vector<16x128xf32>
      tpu.vector_store %arg8[%c0_132, %c0_133], %480 {strides = array<i32>} : memref<16x128xf32, #tpu.memory_space<vmem>>, vector<16x128xf32>,
    } else {
    }
    return
  }
  func.func @transform_0(%arg0: i32, %arg1: i32) -> (i32, i32) {
    %c0_i32 = arith.constant 0 : i32
    %c0_i32_0 = arith.constant 0 : i32
    return %arg0, %c0_i32 : i32, i32
  }
  func.func @transform_1(%arg0: i32, %arg1: i32) -> (i32, i32) {
    %c0_i32 = arith.constant 0 : i32
    return %arg0, %arg1 : i32, i32
  }
  func.func @transform_2(%arg0: i32, %arg1: i32) -> (i32, i32) {
    %c0_i32 = arith.constant 0 : i32
    return %arg0, %arg1 : i32, i32
  }
  func.func @transform_3(%arg0: i32, %arg1: i32) -> (i32, i32) {
    %c0_i32 = arith.constant 0 : i32
    %c0_i32_0 = arith.constant 0 : i32
    %c0_i32_1 = arith.constant 0 : i32
    return %c0_i32, %c0_i32_0 : i32, i32
  }
  func.func @transform_4(%arg0: i32, %arg1: i32) -> (i32, i32) {
    %c0_i32 = arith.constant 0 : i32
    %c0_i32_0 = arith.constant 0 : i32
    return %arg1, %c0_i32 : i32, i32
  }
  func.func @transform_5(%arg0: i32, %arg1: i32) -> (i32, i32) {
    %c0_i32 = arith.constant 0 : i32
    %c0_i32_0 = arith.constant 0 : i32
    return %arg1, %c0_i32 : i32, i32
  }
  func.func @transform_6(%arg0: i32, %arg1: i32) -> (i32, i32) {
    %c0_i32 = arith.constant 0 : i32
    %c0_i32_0 = arith.constant 0 : i32
    return %arg0, %c0_i32 : i32, i32
  }
}

</mosaic_0001>

<bundles_post_ra>
// kernel: tpu_custom_call.1
= control target key start
LH: loop header
LB: loop body
LE: loop exit
PB: predicated region body
PF: predicated region fallthrough
CT: control target
= control target key end

     0   :  { %11 = vsyncpa [#allocation9], 0  ;;  %s2179_s0 = inlined_call_operand.hbm [shape: f32[16,16], index: 0, kind: input, shape index: {}]   ;;  %s2180_s1 = inlined_call_operand.hbm [shape: bf16[16,128], index: 1, kind: input, shape index: {}]   ;;  %s2181_s2 = inlined_call_operand.hbm [shape: bf16[16,128], index: 2, kind: input, shape index: {}]   ;;  %s2182_s3 = inlined_call_operand.hbm [shape: f32[16,128], index: 3, kind: input, shape index: {}]   ;;  %s2183_s4 = inlined_call_operand.hbm [shape: bf16[128,128], index: 4, kind: input, shape index: {}]   ;;  %s2184_s5 = inlined_call_operand.hbm [shape: bf16[128,128], index: 5, kind: input, shape index: {}]   ;;  %s2185_s6 = inlined_call_operand.hbm [shape: f32[16,128], index: 6, kind: output, shape index: {}]  }
   0x1   :  { %12 = vsyncpa [#allocation12], 0 }
   0x2   :  { %13 = vsyncpa [#allocation15], 0 }
   0x3   :  { %14 = vsyncpa [#allocation18], 0 }
   0x4   :  { %15 = vsyncpa [#allocation10], 0  ;;  %s1575_s21 = smov [#allocation11]   ;;  %s1411_s25 = scalar_lea.hbm %s2180_s1, 128 }
   0x5   :  { %s33_s22 = sshll.u32 %s1575_s21, 4  ;;  %p1412_p0 = scmp.ne.s32.totalorder %s2180_s1, %s1411_s25  ;;  %s34_s22 = int_to_ptr.vmem [resolvable:$true] %s33_s22 }
   0x6   :  { %p1415_p1 = scmp.lt.u32.totalorder %s1411_s25, %s2180_s1 }
   0x8   :  { %p1417_p2 = pnand %p1415_p1, %p1412_p0 }
   0xa   :  { %1420 = shalt.err (!%p1417_p2)
}
   0xb   :  { %s1421_s30 = scalar_lea.vmem %s34_s22, 128  ;;  %p1426_p4 = scmp.lt.s32.totalorder %s34_s22, %s34_s22 }
   0xc   :  { %p1422_p3 = scmp.ne.s32.totalorder %s34_s22, %s1421_s30  ;;  %p1427_p5 = scmp.lt.s32.totalorder %s1421_s30, %s1421_s30 }
   0xe   :  { %p1428_p6 = por %p1427_p5, %p1426_p4 }
  0x10   :  { %p1429_p7 = pnand %p1428_p6, %p1422_p3 }
  0x12   :  { %1432 = shalt.err (!%p1429_p7)
}
  0x13   :  { %s1576_s7 = smov 64   ;;  %s1577_s8 = smov 4  }
  0x14   :  { %39 = dma.hbm_to_vmem [thread:$0]  %s2180_s1, 128, %s34_s22, [#allocation12], %s1576_s7, %s1576_s7, %s1577_s8  }
  0x15   :  { %s1578_s11 = smov [#allocation14]   ;;  %s1579_s13 = smov [#allocation8]  }
  0x16   :  { %s57_s12 = sshll.u32 %s1578_s11, 4  ;;  %s21_s14 = sshll.u32 %s1579_s13, 4  ;;  %s58_s12 = int_to_ptr.vmem [resolvable:$true] %s57_s12  ;;  %s22_s14 = int_to_ptr.vmem [resolvable:$true] %s21_s14 }
  0x17   :  { %s1433_s17 = scalar_lea.hbm %s2182_s3, 256 }
  0x18   :  { %p1434_p8 = scmp.ne.s32.totalorder %s2182_s3, %s1433_s17  ;;  %p1437_p9 = scmp.lt.u32.totalorder %s1433_s17, %s2182_s3 }
  0x1a   :  { %p1439_p10 = pnand %p1437_p9, %p1434_p8 }
  0x1c   :  { %1442 = shalt.err (!%p1439_p10)
}
  0x1d   :  { %s1443_s1 = scalar_lea.vmem %s58_s12, 256  ;;  %p1448_p12 = scmp.lt.s32.totalorder %s58_s12, %s58_s12 }
  0x1e   :  { %p1444_p11 = scmp.ne.s32.totalorder %s58_s12, %s1443_s1  ;;  %p1449_p13 = scmp.lt.s32.totalorder %s1443_s1, %s1443_s1 }
  0x20   :  { %p1450_p0 = por %p1449_p13, %p1448_p12 }
  0x22   :  { %p1451_p1 = pnand %p1450_p0, %p1444_p11 }
  0x24   :  { %1454 = shalt.err (!%p1451_p1)
}
  0x25   :  { %s1580_s22 = smov 128   ;;  %s1581_s23 = smov 8  }
  0x26   :  { %63 = dma.hbm_to_vmem [thread:$0]  %s2182_s3, 256, %s58_s12, [#allocation15], %s1580_s22, %s1580_s22, %s1581_s23  }
  0x27   :  { %s1455_s28 = scalar_lea.hbm %s2179_s0, 256 }
  0x28   :  { %p1456_p2 = scmp.ne.s32.totalorder %s2179_s0, %s1455_s28  ;;  %p1459_p3 = scmp.lt.u32.totalorder %s1455_s28, %s2179_s0 }
  0x2a   :  { %p1461_p4 = pnand %p1459_p3, %p1456_p2 }
  0x2c   :  { %1464 = shalt.err (!%p1461_p4)
}
  0x2d   :  { %s1465_s11 = scalar_lea.vmem %s22_s14, 256  ;;  %p1470_p6 = scmp.lt.s32.totalorder %s22_s14, %s22_s14 }
  0x2e   :  { %p1466_p5 = scmp.ne.s32.totalorder %s22_s14, %s1465_s11  ;;  %p1471_p7 = scmp.lt.s32.totalorder %s1465_s11, %s1465_s11 }
  0x30   :  { %p1472_p8 = por %p1471_p7, %p1470_p6 }
  0x32   :  { %p1473_p9 = pnand %p1472_p8, %p1466_p5 }
  0x34   :  { %1476 = shalt.err (!%p1473_p9)
}
  0x35   :  { %27 = dma.hbm_to_vmem [thread:$0]  %s2179_s0, 256, %s22_s14, [#allocation9], %s1580_s22, %s1580_s22, %s1581_s23  }
  0x36   :  { %s1582_s13 = smov [#allocation13]   ;;  %s1583_s16 = smov [#allocation16]  }
  0x37   :  { %s45_s15 = sshll.u32 %s1582_s13, 4  ;;  %s69_s17 = sshll.u32 %s1583_s16, 4  ;;  %s46_s15 = int_to_ptr.vmem [resolvable:$true] %s45_s15  ;;  %s70_s17 = int_to_ptr.vmem [resolvable:$true] %s69_s17 }
  0x38   :  { %s1477_s20 = scalar_lea.hbm %s2181_s2, 128 }
  0x39   :  { %p1478_p10 = scmp.ne.s32.totalorder %s2181_s2, %s1477_s20  ;;  %p1481_p11 = scmp.lt.u32.totalorder %s1477_s20, %s2181_s2 }
  0x3b   :  { %p1483_p12 = pnand %p1481_p11, %p1478_p10 }
  0x3d   :  { %1486 = shalt.err (!%p1483_p12)
}
  0x3e   :  { %s1487_s0 = scalar_lea.vmem %s46_s15, 128  ;;  %p1492_p0 = scmp.lt.s32.totalorder %s46_s15, %s46_s15 }
  0x3f   :  { %p1488_p13 = scmp.ne.s32.totalorder %s46_s15, %s1487_s0  ;;  %p1493_p1 = scmp.lt.s32.totalorder %s1487_s0, %s1487_s0 }
  0x41   :  { %p1494_p2 = por %p1493_p1, %p1492_p0 }
  0x43   :  { %p1495_p3 = pnand %p1494_p2, %p1488_p13 }
  0x45   :  { %1498 = shalt.err (!%p1495_p3)
}
  0x46   :  { %51 = dma.hbm_to_vmem [thread:$0]  %s2181_s2, 128, %s46_s15, [#allocation12], %s1576_s7, %s1576_s7, %s1577_s8  }
  0x47   :  { %s1499_s29 = scalar_lea.hbm %s2183_s4, 1024 }
  0x48   :  { %p1500_p4 = scmp.ne.s32.totalorder %s2183_s4, %s1499_s29  ;;  %p1503_p5 = scmp.lt.u32.totalorder %s1499_s29, %s2183_s4 }
  0x4a   :  { %p1505_p6 = pnand %p1503_p5, %p1500_p4 }
  0x4c   :  { %1508 = shalt.err (!%p1505_p6)
}
  0x4d   :  { %s1509_s3 = scalar_lea.vmem %s70_s17, 1024  ;;  %p1514_p8 = scmp.lt.s32.totalorder %s70_s17, %s70_s17 }
  0x4e   :  { %p1510_p7 = scmp.ne.s32.totalorder %s70_s17, %s1509_s3  ;;  %p1515_p9 = scmp.lt.s32.totalorder %s1509_s3, %s1509_s3 }
  0x50   :  { %p1516_p10 = por %p1515_p9, %p1514_p8 }
  0x52   :  { %p1517_p11 = pnand %p1516_p10, %p1510_p7 }
  0x54   :  { %1520 = shalt.err (!%p1517_p11)
}
  0x55   :  { %75 = dma.hbm_to_vmem [thread:$0]  %s2183_s4, 1024, %s70_s17, [#allocation15], %s1576_s7, %s1576_s7, %s1577_s8  }
  0x56   :  { %s1584_s13 = smov [#allocation17]   ;;  %s1521_s19 = scalar_lea.hbm %s2184_s5, 1024 }
  0x57   :  { %s81_s15 = sshll.u32 %s1584_s13, 4  ;;  %p1522_p12 = scmp.ne.s32.totalorder %s2184_s5, %s1521_s19  ;;  %s82_s15 = int_to_ptr.vmem [resolvable:$true] %s81_s15 }
  0x58   :  { %p1525_p13 = scmp.lt.u32.totalorder %s1521_s19, %s2184_s5 }
  0x5a   :  { %p1527_p0 = pnand %p1525_p13, %p1522_p12 }
  0x5c   :  { %1530 = shalt.err (!%p1527_p0)
}
  0x5d   :  { %s1531_s25 = scalar_lea.vmem %s82_s15, 1024  ;;  %p1536_p2 = scmp.lt.s32.totalorder %s82_s15, %s82_s15 }
  0x5e   :  { %p1532_p1 = scmp.ne.s32.totalorder %s82_s15, %s1531_s25  ;;  %p1537_p3 = scmp.lt.s32.totalorder %s1531_s25, %s1531_s25 }
  0x60   :  { %p1538_p4 = por %p1537_p3, %p1536_p2 }
  0x62   :  { %p1539_p5 = pnand %p1538_p4, %p1532_p1 }
  0x64   :  { %1542 = shalt.err (!%p1539_p5)
}
  0x65   :  { %87 = dma.hbm_to_vmem [thread:$0]  %s2184_s5, 1024, %s82_s15, [#allocation18], %s1576_s7, %s1576_s7, %s1577_s8  }
  0x66   :  { %1565 = dma.done.wait [#allocation9], 256  }
  0x67   :  { %1566 = vsyncadd [#allocation9], 4294967040 }
  0x68   :  { %1567 = dma.done.wait [#allocation12], 256  }
  0x69   :  { %1568 = vsyncadd [#allocation12], 4294967040 }
  0x6a   :  { %1569 = dma.done.wait [#allocation15], 1280  }
  0x6b   :  { %1570 = vsyncadd [#allocation15], 4294966016 }
  0x6c   :  { %1571 = dma.done.wait [#allocation18], 1024  }
  0x6d   :  { %1572 = vsyncadd [#allocation18], 4294966272  ;;  %v1585_v0 = vmov 2   ;;  %v1586_v1 = vmov 3   ;;  %v1727_v2 = vld [vmem:[#allocation8 + $0x8] sm:$0xff]  ;;  %v1729_v3 = vld [vmem:[#allocation8] sm:$0xff] }
  0x6e   :  { %1292 = vset.pattern.permute.xlu1 %v1585_v0  ;;  %1293 = vset.pattern.permute.xlu0 %v1586_v1  ;;  %v674_v4 = vmul.f32 0.5, %v1727_v2  ;;  %v673_v5 = vmul.f32 0.5, %v1729_v3  ;;  %v1323_v6 = vld [vmem:[#allocation16] sm:$0xff]   ;;  %s1587_s5 = smov 126   ;;  %v1325_v8 = vld [vmem:[#allocation16 + $0x8] sm:$0xff]   ;;  %v1327_v14 = vld [vmem:[#allocation16 + $0x10] sm:$0xff]  }
  0x6f   :  { %v1324_v7 = vld [vmem:[#allocation17] sm:$0xff]   ;;  %1227 = vmatprep.subr.bf16.mxu0 %v1323_v6  ;;  %v1326_v11 = vld [vmem:[#allocation17 + $0x8] sm:$0xff]   ;;  %v1328_v16 = vld [vmem:[#allocation17 + $0x10] sm:$0xff]   ;;  %vm119_vm1 = vcmask 7168   ;;  %v1588_v44 = vmov 0.0   ;;  %s1589_s7 = smov 1  }
  0x70   :  { %679 = vrot.lane.b32.xlu0 %v674_v4, %s1587_s5  ;;  %677 = vrot.lane.b32.xlu1 %v673_v5, %s1587_s5  ;;  %v124_v9 = vld [vmem:[#allocation11] sm:$0xff]   ;;  %v1329_v21 = vld [vmem:[#allocation16 + $0x18] sm:$0xff]   ;;  %v1333_v25 = vld [vmem:[#allocation16 + $0x28] sm:$0xff]   ;;  %120 = vst.msk [vmem:[#allocation6] sm:$0xff] %vm119_vm1, %v1588_v44  ;;  %s1594_s8 = smov 127   ;;  %s1599_s0 = smov [#allocation19]  }
  0x71   :  { %1247 = vmatprep.subr.bf16.mxu1 %v1324_v7  ;;  %v1733_v10 = vunpack.c.l.bf16 %v124_v9  ;;  %v1735_v12 = vunpack.c.h.bf16 %v124_v9  ;;  %1228 = vmatpush3.bf16.msra.mxu0 %v1323_v6  ;;  %v1330_v22 = vld [vmem:[#allocation17 + $0x18] sm:$0xff]   ;;  %v1331_v23 = vld [vmem:[#allocation16 + $0x20] sm:$0xff]   ;;  %v1334_v26 = vld [vmem:[#allocation17 + $0x28] sm:$0xff]   ;;  %121 = vst.msk [vmem:[#allocation6 + $0x8] sm:$0xff] %vm119_vm1, %v1588_v44  ;;  %s1174_s14 = sshll.u32 %s1599_s0, 4  ;;  %s1175_s14 = int_to_ptr.vmem [resolvable:$true] %s1174_s14 }
  0x72   :  { %1248 = vmatpush3.bf16.msra.mxu1 %v1324_v7  ;;  %1229 = vmatprep.subr.bf16.mxu0 %v1325_v8  ;;  %v1332_v24 = vld [vmem:[#allocation17 + $0x20] sm:$0xff]   ;;  %v297_v27 = vld [vmem:[#allocation13] sm:$0xff]   ;;  %v1335_v33 = vld [vmem:[#allocation16 + $0x30] sm:$0xff]   ;;  %122 = vst.msk [vmem:[#allocation7] sm:$0xff] %vm119_vm1, %v1588_v44  ;;  %s1543_s26 = scalar_lea.vmem %s1175_s14, 256  ;;  %p1548_p7 = scmp.lt.s32.totalorder %s1175_s14, %s1175_s14 }
  0x73   :  { %v144_v13 = vand.u32 2147483647, %v1733_v10  ;;  %1249 = vmatprep.subr.bf16.mxu1 %v1326_v11  ;;  %v145_v15 = vand.u32 2147483647, %v1735_v12  ;;  %1243 = vmatprep.mubr.bf16.mxu0 %v124_v9  ;;  %v1739_v28 = vunpack.c.l.bf16 %v297_v27  ;;  %v1741_v29 = vunpack.c.h.bf16 %v297_v27  ;;  %v1336_v34 = vld [vmem:[#allocation17 + $0x30] sm:$0xff]   ;;  %v1337_v41 = vld [vmem:[#allocation16 + $0x38] sm:$0xff]   ;;  %p1544_p6 = scmp.ne.s32.totalorder %s1175_s14, %s1543_s26  ;;  %p1549_p8 = scmp.lt.s32.totalorder %s1543_s26, %s1543_s26 }
  0x74   :  { %1263 = vmatprep.mubr.bf16.mxu1 %v297_v27  ;;  %v1338_v42 = vld [vmem:[#allocation17 + $0x38] sm:$0xff]   ;;  %vm162_vm0 = vcmp.ge.f32.partialorder %v1733_v10, 0.0  ;;  %123 = vst.msk [vmem:[#allocation7 + $0x8] sm:$0xff] %vm119_vm1, %v1588_v44  ;;  %vm163_vm2 = vcmp.ge.f32.partialorder %v1735_v12, 0.0  ;;  %v154_v45 = vmax.f32 %v1733_v10, 0.0  ;;  %v155_v50 = vmax.f32 %v1735_v12, 0.0 }
  0x75   :  { %v146_v17 = vsub.f32 0.0, %v144_v13  ;;  %v147_v18 = vsub.f32 0.0, %v145_v15  ;;  %1230 = vmatpush3.bf16.msra.mxu0 %v1325_v8  ;;  %v317_v30 = vand.u32 2147483647, %v1739_v28  ;;  %v318_v31 = vand.u32 2147483647, %v1741_v29  ;;  %p1550_p9 = por %p1549_p8, %p1548_p7 }
  0x76   :  { %1250 = vmatpush3.bf16.msra.mxu1 %v1326_v11  ;;  %1231 = vmatprep.subr.bf16.mxu0 %v1327_v14  ;;  %vm335_vm3 = vcmp.ge.f32.partialorder %v1739_v28, 0.0  ;;  %vm336_vm4 = vcmp.ge.f32.partialorder %v1741_v29, 0.0  ;;  %v327_v9 = vmax.f32 %v1739_v28, 0.0  ;;  %v1592_v27 = vmov 6  }
  0x77   :  { %v148_v19 = vmul.f32 1.442695, %v146_v17  ;;  %v150_v20 = vmul.f32 1.442695, %v147_v18  ;;  %1251 = vmatprep.subr.bf16.mxu1 %v1328_v16  ;;  %v319_v37 = vsub.f32 0.0, %v317_v30  ;;  %v320_v38 = vsub.f32 0.0, %v318_v31  ;;  %p1551_p10 = pnand %p1550_p9, %p1544_p6 }
  0x78   :  { %v1593_v28 = vmov 7   ;;  %v1595_v31 = vmov 8  }
  0x79   :  { %1343 = vpow2.f32 %v148_v19  ;;  %1232 = vmatpush3.bf16.msra.mxu0 %v1327_v14  ;;  %v321_v40 = vmul.f32 1.442695, %v319_v37  ;;  %v323_v43 = vmul.f32 1.442695, %v320_v38  ;;  %v328_v14 = vmax.f32 %v1741_v29, 0.0 }
  0x7a   :  { %1345 = vpow2.f32 %v150_v20  ;;  %1252 = vmatpush3.bf16.msra.mxu1 %v1328_v16  ;;  %1233 = vmatprep.subr.bf16.mxu0 %v1329_v21  ;;  %v1590_v19 = vmov 4   ;;  %v1591_v20 = vmov 5  }
  0x7b   :  { %1253 = vmatprep.subr.bf16.mxu1 %v1330_v22 }
  0x7d   :  { %1234 = vmatpush3.bf16.msra.mxu0 %v1329_v21 }
  0x7e   :  { %1254 = vmatpush3.bf16.msra.mxu1 %v1330_v22  ;;  %1235 = vmatprep.subr.bf16.mxu0 %v1331_v23 }
  0x7f   :  { %1255 = vmatprep.subr.bf16.mxu1 %v1332_v24 }
  0x81   :  { %1236 = vmatpush3.bf16.msra.mxu0 %v1331_v23 }
  0x82   :  { %1256 = vmatpush3.bf16.msra.mxu1 %v1332_v24  ;;  %1237 = vmatprep.subr.bf16.mxu0 %v1333_v25 }
  0x83   :  { %v1344_v32 = vpop.eup %1343  ;;  %1257 = vmatprep.subr.bf16.mxu1 %v1334_v26 }
  0x84   :  { %v1346_v35 = vpop.eup %1345  ;;  %v152_v36 = vadd.f32 1.0, %v1344_v32  ;;  %v164_v46 = vsel %vm162_vm0, 1.0, %v1344_v32  ;;  %v1596_v32 = vmov 1  }
  0x85   :  { %v153_v39 = vadd.f32 1.0, %v1346_v35  ;;  %1238 = vmatpush3.bf16.msra.mxu0 %v1333_v25  ;;  %v165_v51 = vsel %vm163_vm2, 1.0, %v1346_v35  ;;  %v287_v35 = vld [vmem:[#allocation6 + $0x8] sm:$0xff] }
  0x86   :  { %1347 = vlog2.f32 %v152_v36  ;;  %1258 = vmatpush3.bf16.msra.mxu1 %v1334_v26  ;;  %1239 = vmatprep.subr.bf16.mxu0 %v1335_v33 }
  0x87   :  { %1349 = vrcp.f32 %v152_v36  ;;  %1259 = vmatprep.subr.bf16.mxu1 %v1336_v34 }
  0x88   :  { %1351 = vlog2.f32 %v153_v39 }
  0x89   :  { %1353 = vrcp.f32 %v153_v39  ;;  %1240 = vmatpush3.bf16.msra.mxu0 %v1335_v33 }
  0x8a   :  { %1260 = vmatpush3.bf16.msra.mxu1 %v1336_v34  ;;  %1355 = vpow2.f32 %v321_v40  ;;  %1241 = vmatprep.subr.bf16.mxu0 %v1337_v41 }
  0x8b   :  { %1261 = vmatprep.subr.bf16.mxu1 %v1338_v42  ;;  %1357 = vpow2.f32 %v323_v43 }
  0x8d   :  { %1242 = vmatpush3.bf16.msra.mxu0 %v1337_v41  ;;  %v559_v41 = vlaneseq }
  0x8e   :  { %1262 = vmatpush3.bf16.msra.mxu1 %v1338_v42 }
  0x90   :  { %v1348_v47 = vpop.eup %1347 }
  0x91   :  { %v1350_v48 = vpop.eup %1349  ;;  %v157_v49 = vmul.f32 0.6931472, %v1348_v47 }
  0x92   :  { %v1352_v52 = vpop.eup %1351  ;;  %v168_v53 = vmul.f32 %v1350_v48, %v164_v46  ;;  %v459_v46 = vld [vmem:[#allocation7] sm:$0xff] }
  0x93   :  { %v1354_v54 = vpop.eup %1353  ;;  %v160_v55 = vadd.f32 %v157_v49, %v154_v45  ;;  %v159_v56 = vmul.f32 0.6931472, %v1352_v52  ;;  %v1797_v45 = vshrl.u32 %v559_v41, 7  ;;  %v460_v52 = vld [vmem:[#allocation7 + $0x8] sm:$0xff] }
  0x94   :  { %v1356_v57 = vpop.eup %1355  ;;  %v169_v58 = vmul.f32 %v1354_v54, %v165_v51 }
  0x95   :  { %v1358_v59 = vpop.eup %1357  ;;  %288 = vadd.xlane.f32.xlu0 %v160_v55  ;;  %v161_v60 = vadd.f32 %v159_v56, %v155_v50  ;;  %v325_v61 = vadd.f32 1.0, %v1356_v57  ;;  %v337_v4 = vsel %vm335_vm3, 1.0, %v1356_v57  ;;  %v1800_v48 = vsub.s32 3, %v1797_v45  ;;  %v1802_v50 = vld [vmem:[#allocation14] sm:$0xff] }
  0x96   :  { %v170_v62 = vpack.c.bf16 %v169_v58, %v168_v53  ;;  %v326_v63 = vadd.f32 1.0, %v1358_v59  ;;  %v338_v5 = vsel %vm336_vm4, 1.0, %v1358_v59  ;;  %v1806_v53 = vsub.s32 2, %v1797_v45 }
  0x97   :  { %1359 = vrcp.f32 %v325_v61  ;;  %v626_v56 = vrot.slane %v1802_v50, %v1800_v48  ;;  %v2186_v59 = vsub.s32 4, %v1797_v45 }
  0x98   :  { %1244 = vmatmul.mubr.bf16.vlgmr.msra.gmra.mrb[0].mxu0 %v170_v62  ;;  %1361 = vrcp.f32 %v326_v63 }
  0x99   :  { %290 = vadd.xlane.f32.xlu0 %v161_v60  ;;  %1363 = vlog2.f32 %v325_v61  ;;  %v610_v61 = vrot.slane %v1802_v50, %v1806_v53 }
  0x9a   :  { %1365 = vlog2.f32 %v326_v63 }
  0xa1   :  { %v1360_v6 = vpop.eup %1359 }
  0xa2   :  { %v1362_v7 = vpop.eup %1361  ;;  %v341_v8 = vmul.f32 %v1360_v6, %v337_v4 }
  0xa3   :  { %v1364_v10 = vpop.eup %1363  ;;  %v342_v11 = vmul.f32 %v1362_v7, %v338_v5  ;;  %v644_v7 = vrot.slane %v1802_v50, %v2186_v59 }
  0xa4   :  { %v1366_v12 = vpop.eup %1365  ;;  %v330_v13 = vmul.f32 0.6931472, %v1364_v10 }
  0xa5   :  { %v343_v15 = vpack.c.bf16 %v342_v11, %v341_v8  ;;  %v332_v16 = vmul.f32 0.6931472, %v1366_v12 }
  0xa6   :  { %v333_v17 = vadd.f32 %v330_v13, %v327_v9 }
  0xa7   :  { %1264 = vmatmul.mubr.bf16.vlgmr.msra.gmra.mrb[0].mxu1 %v343_v15  ;;  %v334_v18 = vadd.f32 %v332_v16, %v328_v14 }
  0xa8   :  { %461 = vadd.xlane.f32.xlu1 %v333_v17 }
  0xac   :  { %463 = vadd.xlane.f32.xlu1 %v334_v18  ;;  %v661_v18 = vsub.s32 5, %v1797_v45 }
  0xaf   :  { %479 = vrot.lane.b32.xlu0 %v1729_v3, %s1589_s7 }
  0xb3   :  { %481 = vrot.lane.b32.xlu0 %v1727_v2, %s1589_s7 }
  0xb7   :  { %616 = vperm.xlu0 %1293, %v1729_v3  }
  0xbb   :  { %1296 = vset.pattern.permute.xlu0 %v1590_v19 }
  0xbc   :  { %638 = vperm.xlu0 %1296, %v1727_v2  }
  0xbd   :  { %604 = vperm.xlu1 %1292, %v1727_v2  }
  0xc0   :  { %1297 = vset.pattern.permute.xlu0 %v1585_v0 }
  0xc1   :  { %1294 = vset.pattern.permute.xlu1 %v1586_v1  ;;  %600 = vperm.xlu0 %1297, %v1729_v3  }
  0xc2   :  { %620 = vperm.xlu1 %1294, %v1727_v2  }
  0xc6   :  { %1295 = vset.pattern.permute.xlu1 %v1590_v19 }
  0xc7   :  { %634 = vperm.xlu1 %1295, %v1729_v3  }
  0xcb   :  { %1298 = vset.pattern.permute.xlu1 %v1591_v20 }
  0xcc   :  { %652 = vperm.xlu1 %1298, %v1729_v3  }
  0xd0   :  { %656 = vperm.xlu1 %1298, %v1727_v2  }
  0xd4   :  { %1299 = vset.pattern.permute.xlu1 %v1585_v0 }
  0xe2   :  { %v680_v21 = vpop.permute.xlu0 %679  ;;  %v678_v22 = vpop.permute.xlu1 %677 }
  0xe3   :  { %v686_v23 = vadd.f32 %v680_v21, %v1727_v2  ;;  %v685_v24 = vadd.f32 %v678_v22, %v1729_v3  ;;  %v684_v25 = vsub.f32 %v1727_v2, %v680_v21  ;;  %v683_v26 = vsub.f32 %v1729_v3, %v678_v22 }
  0xe5   :  { %717 = vperm.xlu1 %1299, %v686_v23   ;;  %712 = vperm.xlu0 %1297, %v685_v24   ;;  %v1775_v29 = vsub.f32 %v685_v24, %v683_v26  ;;  %v1779_v30 = vsub.f32 %v686_v23, %v684_v25 }
  0xe9   :  { %728 = vperm.xlu1 %1299, %v683_v26   ;;  %733 = vperm.xlu0 %1297, %v684_v25  }
  0xed   :  { %1300 = vset.pattern.permute.xlu1 %v1592_v27  ;;  %1301 = vset.pattern.permute.xlu0 %v1593_v28 }
  0xee   :  { %922 = vperm.xlu1 %1300, %v685_v24   ;;  %954 = vperm.xlu0 %1301, %v685_v24  }
  0xf2   :  { %936 = vperm.xlu1 %1300, %v683_v26   ;;  %972 = vperm.xlu0 %1301, %v684_v25  }
  0xf6   :  { %940 = vperm.xlu1 %1300, %v684_v25   ;;  %697 = vrot.lane.b32.xlu0 %v1775_v29, %s1594_s8 }
  0xf7   :  { %1304 = vset.pattern.permute.xlu0 %v1586_v1 }
  0xfa   :  { %1302 = vset.pattern.permute.xlu1 %v1593_v28  ;;  %699 = vrot.lane.b32.xlu0 %v1779_v30, %s1594_s8 }
  0xfb   :  { %958 = vperm.xlu1 %1302, %v686_v23  }
  0xfe   :  { %751 = vperm.xlu0 %1304, %v686_v23  }
  0xff   :  { %968 = vperm.xlu1 %1302, %v683_v26  }
 0x102   :  { %1305 = vset.pattern.permute.xlu0 %v1592_v27 }
 0x103   :  { %1303 = vset.pattern.permute.xlu1 %v1586_v1  ;;  %926 = vperm.xlu0 %1305, %v686_v23   ;;  %v286_v1 = vld [vmem:[#allocation6] sm:$0xff] }
 0x104   :  { %747 = vperm.xlu1 %1303, %v685_v24  }
 0x107   :  { %843 = vperm.xlu0 %1305, %v1727_v2  }
 0x108   :  { %761 = vperm.xlu1 %1303, %v683_v26  }
 0x10b   :  { %1308 = vset.pattern.permute.xlu0 %v1595_v31 }
 0x10c   :  { %765 = vperm.xlu1 %1303, %v684_v25   ;;  %873 = vperm.xlu0 %1308, %v1729_v3  }
 0x110   :  { %1306 = vset.pattern.permute.xlu1 %v1592_v27  ;;  %1310 = vset.pattern.permute.xlu0 %v1596_v32 }
 0x111   :  { %839 = vperm.xlu1 %1306, %v1729_v3  }
 0x115   :  { %1307 = vset.pattern.permute.xlu1 %v1593_v28  ;;  %v662_v28 = vrot.slane %v1802_v50, %v661_v18 }
 0x116   :  { %855 = vperm.xlu1 %1307, %v1729_v3  }
 0x11a   :  { %859 = vperm.xlu1 %1307, %v1727_v2  }
 0x11e   :  { %1309 = vset.pattern.permute.xlu1 %v1595_v31 }
 0x11f   :  { %877 = vperm.xlu1 %1309, %v1727_v2  }
 0x122   :  { %v289_v33 = vpop.xlane.xlu0 %288 }
 0x123   :  { %v292_v34 = vadd.f32 %v289_v33, %v286_v1  ;;  %1311 = vset.pattern.permute.xlu1 %v1596_v32 }
 0x125   :  { %295 = vst.msk [vmem:[#allocation6] sm:$0xff] %vm119_vm1, %v292_v34 }
 0x126   :  { %v291_v36 = vpop.xlane.xlu0 %290 }
 0x127   :  { %v293_v37 = vadd.f32 %v291_v36, %v287_v35 }
 0x129   :  { %296 = vst.msk [vmem:[#allocation6 + $0x8] sm:$0xff] %vm119_vm1, %v293_v37 }
 0x12a   :  { %v480_v38 = vpop.permute.xlu0 %479 }
 0x12b   :  { %v485_v39 = vsub.f32 %v1729_v3, %v480_v38 }
 0x12d   :  { %v487_v40 = vmul.f32 1.442695, %v485_v39 }
 0x12e   :  { %v482_v42 = vpop.permute.xlu0 %481 }
 0x12f   :  { %1367 = vpow2.f32 %v487_v40  ;;  %v486_v43 = vsub.f32 %v1727_v2, %v482_v42 }
 0x131   :  { %v489_v44 = vmul.f32 1.442695, %v486_v43 }
 0x133   :  { %1369 = vpow2.f32 %v489_v44 }
 0x135   :  { %v462_v47 = vpop.xlane.xlu1 %461 }
 0x136   :  { %v465_v49 = vadd.f32 %v462_v47, %v459_v46  ;;  %v617_v51 = vpop.permute.xlu0 %616 }
 0x137   :  { %v627_v4 = vsub.f32 %v617_v51, %v626_v56 }
 0x138   :  { %467 = vst.msk [vmem:[#allocation7] sm:$0xff] %vm119_vm1, %v465_v49 }
 0x139   :  { %v1368_v54 = vpop.eup %1367  ;;  %v464_v55 = vpop.xlane.xlu1 %463  ;;  %v629_v10 = vand.u32 2147483647, %v627_v4 }
 0x13a   :  { %v491_v57 = vadd.f32 1.0, %v1368_v54  ;;  %v466_v58 = vadd.f32 %v464_v55, %v460_v52 }
 0x13b   :  { %v639_v60 = vpop.permute.xlu0 %638 }
 0x13c   :  { %1371 = vrcp.f32 %v491_v57  ;;  %468 = vst.msk [vmem:[#allocation7 + $0x8] sm:$0xff] %vm119_vm1, %v466_v58  ;;  %v646_v8 = vsub.f32 %v639_v60, %v644_v7 }
 0x13d   :  { %v1370_v62 = vpop.eup %1369  ;;  %v605_v63 = vpop.permute.xlu1 %604 }
 0x13e   :  { %v492_v5 = vadd.f32 1.0, %v1370_v62  ;;  %v612_v6 = vsub.f32 %v605_v63, %v610_v61  ;;  %v648_v17 = vand.u32 2147483647, %v646_v8 }
 0x140   :  { %1373 = vrcp.f32 %v492_v5  ;;  %v601_v9 = vpop.permute.xlu0 %600  ;;  %v614_v13 = vand.u32 2147483647, %v612_v6 }
 0x141   :  { %v621_v11 = vpop.permute.xlu1 %620  ;;  %v611_v12 = vsub.f32 %v601_v9, %v610_v61  ;;  %v687_v9 = vmul.f32 0.5, %v1802_v50 }
 0x142   :  { %v628_v14 = vsub.f32 %v621_v11, %v626_v56 }
 0x143   :  { %v613_v15 = vand.u32 2147483647, %v611_v12 }
 0x144   :  { %v630_v16 = vand.u32 2147483647, %v628_v14 }
 0x145   :  { %v631_v19 = vadd.f32 %v629_v10, %v613_v15 }
 0x146   :  { %v1372_v20 = vpop.eup %1371  ;;  %v632_v21 = vadd.f32 %v630_v16, %v614_v13  ;;  %v635_v22 = vpop.permute.xlu1 %634 }
 0x147   :  { %v645_v23 = vsub.f32 %v635_v22, %v644_v7  ;;  %v497_v24 = vsub.f32 1.0, %v1372_v20  ;;  %v503_v25 = vadd.f32 1e-08, %v1372_v20  ;;  %v513_v51 = vmul.f32 %v1372_v20, %v1372_v20 }
 0x148   :  { %v650_v26 = vadd.f32 %v648_v17, %v632_v21 }
 0x149   :  { %v647_v32 = vand.u32 2147483647, %v645_v23  ;;  %1375 = vlog2.f32 %v503_v25  ;;  %v517_v33 = vadd.f32 1e-08, %v497_v24  ;;  %v525_v34 = vsub.f32 1.0, %v497_v24 }
 0x14a   :  { %v1374_v1 = vpop.eup %1373  ;;  %v499_v43 = vmul.f32 %v497_v24, %v497_v24  ;;  %v515_v63 = vmul.f32 -0.75, %v513_v51 }
 0x14b   :  { %v653_v35 = vpop.permute.xlu1 %652  ;;  %v649_v36 = vadd.f32 %v647_v32, %v631_v19  ;;  %v498_v37 = vsub.f32 1.0, %v1374_v1  ;;  %v504_v38 = vadd.f32 1e-08, %v1374_v1  ;;  %1377 = vlog2.f32 %v517_v33 }
 0x14c   :  { %v663_v39 = vsub.f32 %v653_v35, %v662_v28  ;;  %v537_v42 = vadd.f32 1e-08, %v525_v34  ;;  %v501_v56 = vmul.f32 0.25, %v499_v43  ;;  %v527_v57 = vmul.f32 %v525_v34, %v525_v34 }
 0x14d   :  { %1379 = vlog2.f32 %v504_v38  ;;  %v518_v40 = vadd.f32 1e-08, %v498_v37  ;;  %v526_v46 = vsub.f32 1.0, %v498_v37  ;;  %v500_v61 = vmul.f32 %v498_v37, %v498_v37 }
 0x14e   :  { %v665_v41 = vand.u32 2147483647, %v663_v39  ;;  %v514_v62 = vmul.f32 %v1374_v1, %v1374_v1  ;;  %v529_v8 = vmul.f32 0.25, %v527_v57  ;;  %v535_v17 = vmul.f32 -0.75, %v499_v43 }
 0x14f   :  { %v657_v44 = vpop.permute.xlu1 %656  ;;  %1381 = vlog2.f32 %v518_v40  ;;  %v538_v54 = vadd.f32 1e-08, %v526_v46  ;;  %v502_v11 = vmul.f32 0.25, %v500_v61  ;;  %v528_v18 = vmul.f32 %v526_v46, %v526_v46 }
 0x150   :  { %v1819_v47 = vadd.f32 %v665_v41, %v649_v36  ;;  %v664_v49 = vsub.f32 %v657_v44, %v662_v28  ;;  %1383 = vlog2.f32 %v537_v42  ;;  %v516_v13 = vmul.f32 -0.75, %v514_v62 }
 0x151   :  { %1385 = vlog2.f32 %v538_v54  ;;  %v689_v28 = vrot.slane %v687_v9, 2  ;;  %v530_v1 = vmul.f32 0.25, %v528_v18  ;;  %v536_v41 = vmul.f32 -0.75, %v500_v61 }
 0x152   :  { %v666_v52 = vand.u32 2147483647, %v664_v49 }
 0x153   :  { %v1376_v55 = vpop.eup %1375  ;;  %v1825_v37 = vadd.f32 %v689_v28, %v1802_v50  ;;  %v1828_v40 = vsub.f32 %v1802_v50, %v689_v28 }
 0x154   :  { %v506_v58 = vmul.f32 0.6931472, %v1376_v55  ;;  %v1821_v60 = vadd.f32 %v666_v52, %v650_v26 }
 0x155   :  { %v1378_v4 = vpop.eup %1377  ;;  %v1834_v44 = vrot.slane %v1825_v37, %v1806_v53  ;;  %v1838_v49 = vrot.slane %v1828_v40, %v1806_v53 }
 0x156   :  { %v509_v5 = vsub.f32 0.0, %v506_v58  ;;  %v520_v7 = vmul.f32 0.6931472, %v1378_v4 }
 0x157   :  { %v1380_v6 = vpop.eup %1379 }
 0x158   :  { %v511_v10 = vmul.f32 %v509_v5, %v501_v56  ;;  %v508_v12 = vmul.f32 0.6931472, %v1380_v6  ;;  %v523_v15 = vmul.f32 %v520_v7, %v515_v63  ;;  %v531_v16 = vsub.f32 0.0, %v520_v7 }
 0x159   :  { %v1382_v14 = vpop.eup %1381 }
 0x15a   :  { %v1384_v19 = vpop.eup %1383  ;;  %v510_v20 = vsub.f32 0.0, %v508_v12  ;;  %v522_v21 = vmul.f32 0.6931472, %v1382_v14  ;;  %v547_v22 = vsub.f32 %v523_v15, %v511_v10  ;;  %v533_v23 = vmul.f32 %v531_v16, %v529_v8  ;;  %v1056_v15 = vld [vmem:[#allocation6 + $0x8] sm:$0xff]  ;;  %v1112_v16 = vld [vmem:[#allocation7 + $0x8] sm:$0xff] }
 0x15b   :  { %v540_v24 = vmul.f32 0.6931472, %v1384_v19  ;;  %v1386_v36 = vpop.eup %1385 }
 0x15c   :  { %v512_v25 = vmul.f32 %v510_v20, %v502_v11  ;;  %v524_v26 = vmul.f32 %v522_v21, %v516_v13  ;;  %551 = vperm.xlu0 %1310, %v547_v22   ;;  %v532_v33 = vsub.f32 0.0, %v522_v21  ;;  %v545_v38 = vadd.f32 %v533_v23, %v511_v10 }
 0x15d   :  { %v543_v32 = vmul.f32 %v540_v24, %v535_v17  ;;  %v542_v42 = vmul.f32 0.6931472, %v1386_v36 }
 0x15e   :  { %v548_v34 = vsub.f32 %v524_v26, %v512_v25  ;;  %v534_v39 = vmul.f32 %v532_v33, %v530_v1  ;;  %v1909_v26 = vld [vmem:[#allocation14 + $0x8] sm:$0xff] }
 0x15f   :  { %v577_v35 = vsub.f32 %v543_v32, %v533_v23  ;;  %v544_v54 = vmul.f32 %v542_v42, %v536_v41  ;;  %v910_v28 = vmul.f32 0.5, %v1909_v26  ;;  %vm476_vm5 = vcmp.gt.f32.partialorder %v1909_v26, 0.5 }
 0x160   :  { %556 = vperm.xlu0 %1310, %v548_v34   ;;  %v546_v46 = vadd.f32 %v534_v39, %v512_v25  ;;  %v1929_v42 = vrot.slane %v1825_v37, %v1800_v48 }
 0x161   :  { %581 = vperm.xlu1 %1311, %v577_v35   ;;  %v578_v58 = vsub.f32 %v544_v54, %v534_v39  ;;  %v912_v33 = vrot.slane %v910_v28, 2  ;;  %v1919_v35 = vsub.s32 6, %v1797_v45  ;;  %v864_v39 = vsub.s32 7, %v1797_v45 }
 0x162   :  { %v1965_v28 = vmul.f32 5.0, %v1819_v47 }
 0x163   :  { %v915_v36 = vadd.f32 %v912_v33, %v1802_v50  ;;  %v914_v41 = vsub.f32 %v1802_v50, %v912_v33 }
 0x164   :  { %v1830_v43 = vpop.permute.xlu0 %712  ;;  %567 = vperm.xlu0 %1310, %v545_v38   ;;  %v1840_v51 = vpop.permute.xlu1 %717  ;;  %2200 = vst [vmem:[#allocation35_spill] sm:$0xff] %v1965_v28 }
 0x165   :  { %1313 = vset.pattern.permute.xlu1 %v1592_v27  ;;  %v805_v52 = vmax.f32 %v1840_v51, %v1834_v44  ;;  %v804_v47 = vmax.f32 %v1830_v43, %v1834_v44 }
 0x168   :  { %v1845_v55 = vpop.permute.xlu0 %733  ;;  %572 = vperm.xlu0 %1310, %v546_v46   ;;  %v1933_v46 = vrot.slane %v1828_v40, %v1800_v48 }
 0x169   :  { %v807_v56 = vmin.f32 %v1845_v55, %v1838_v49 }
 0x16b   :  { %v1849_v57 = vsub.f32 %v805_v52, %v807_v56  ;;  %v1851_v61 = vpop.f32.mrb[0].mxu0 }
 0x16c   :  { %v1853_v62 = vpop.f32.mrb[1].mxu0  ;;  %586 = vperm.xlu0 %1310, %v578_v58   ;;  %v561_v58 = vsub.s32 0, %v1797_v45 }
 0x16d   :  { %2190 = vst [vmem:[#allocation25_spill] sm:$0xff] %v1853_v62  ;;  %v1855_v63 = vpop.permute.xlu0 %954  ;;  %v1857_v4 = vpop.f32.mrb[2].mxu0 }
 0x16e   :  { %v1859_v5 = vpop.f32.mrb[3].mxu0  ;;  %v1968_v59 = vrot.slane %v1802_v50, %v561_v58 }
 0x16f   :  { %2191 = vst [vmem:[#allocation26_spill] sm:$0xff] %v1859_v5 }
 0x170   :  { %1312 = vset.pattern.permute.xlu0 %v1592_v27  ;;  %v1597_v27 = vmov 9   ;;  %2201 = vst [vmem:[#allocation36_spill] sm:$0xff] %v1968_v59 }
 0x171   :  { %v1861_v6 = vpop.permute.xlu0 %972 }
 0x175   :  { %v698_v7 = vpop.permute.xlu0 %697 }
 0x176   :  { %v703_v8 = vmul.f32 %v698_v7, %v1775_v29  ;;  %v1111_v29 = vld [vmem:[#allocation7] sm:$0xff]  ;;  %v932_v7 = vrot.slane %v915_v36, %v1919_v35 }
 0x178   :  { %988 = vperm.xlu0 %1312, %v703_v8  }
 0x179   :  { %v700_v9 = vpop.permute.xlu0 %699 }
 0x17a   :  { %v704_v10 = vmul.f32 %v700_v9, %v1779_v30  ;;  %v1866_v11 = vpop.f32.mrb[0].mxu1  ;;  %v1598_v30 = vmov 0   ;;  %v946_v9 = vrot.slane %v914_v41, %v1919_v35 }
 0x17b   :  { %v1868_v12 = vpop.f32.mrb[1].mxu1  ;;  %v1937_v54 = vsel %vm476_vm5, 1, %v1598_v30 }
 0x17c   :  { %2192 = vst [vmem:[#allocation27_spill] sm:$0xff] %v1868_v12  ;;  %992 = vperm.xlu1 %1313, %v704_v10   ;;  %v1870_v13 = vpop.f32.mrb[2].mxu1  ;;  %1315 = vset.pattern.permute.xlu0 %v1585_v0  ;;  %2198 = vst [vmem:[#allocation33_spill] sm:$0xff] %v1937_v54 }
 0x17d   :  { %2193 = vst [vmem:[#allocation28_spill] sm:$0xff] %v1870_v13  ;;  %v1873_v14 = vpop.f32.mrb[3].mxu1  ;;  %787 = vperm.xlu0 %1315, %v704_v10   ;;  %v1946_v10 = vrot.slane %v914_v41, %v864_v39 }
 0x17e   :  { %2194 = vst [vmem:[#allocation29_spill] sm:$0xff] %v1873_v14  ;;  %v1971_v14 = vmul.f32 5.0, %v1821_v60 }
 0x17f   :  { %v980_v59 = vmax.f32 %v1861_v6, %v1946_v10 }
 0x180   :  { %1314 = vset.pattern.permute.xlu1 %v1585_v0  ;;  %v1055_v0 = vld [vmem:[#allocation6] sm:$0xff]  ;;  %2202 = vst [vmem:[#allocation37_spill] sm:$0xff] %v1971_v14 }
 0x181   :  { %782 = vperm.xlu1 %1314, %v703_v8   ;;  %1317 = vset.pattern.permute.xlu0 %v1595_v31  ;;  %v1943_v8 = vrot.slane %v915_v36, %v864_v39 }
 0x182   :  { %1083 = vperm.xlu0 %1317, %v1851_v61  }
 0x183   :  { %v1017_v12 = vmax.f32 %v1855_v63, %v1943_v8 }
 0x185   :  { %1316 = vset.pattern.permute.xlu1 %v1595_v31 }
 0x186   :  { %1135 = vperm.xlu1 %1316, %v1866_v11   ;;  %1319 = vset.pattern.permute.xlu0 %v1597_v27 }
 0x187   :  { %895 = vperm.xlu0 %1319, %v1727_v2   ;;  %v1885_v2 = vpop.permute.xlu1 %728 }
 0x18a   :  { %1140 = vperm.xlu1 %1316, %v1870_v13   ;;  %v965_v13 = vmin.f32 %v1855_v63, %v1943_v8  ;;  %v1020_v63 = vmin.f32 %v1861_v6, %v1946_v10 }
 0x18b   :  { %1321 = vset.pattern.permute.xlu0 %v1598_v30  ;;  %v1887_v17 = vpop.permute.xlu1 %922 }
 0x18c   :  { %1117 = vperm.xlu0 %1321, %v1111_v29   ;;  %v916_v29 = vsub.f32 %v915_v36, %v914_v41  ;;  %v806_v36 = vmin.f32 %v1885_v2, %v1838_v49  ;;  %v1009_v5 = vmax.f32 %v1887_v17, %v932_v7 }
 0x18e   :  { %1088 = vperm.xlu1 %1316, %v1857_v4   ;;  %v918_v14 = vrot.slane %v916_v29, 1 }
 0x18f   :  { %v1889_v18 = vpop.permute.xlu1 %936 }
 0x190   :  { %1322 = vset.pattern.permute.xlu0 %v1595_v31  ;;  %v1895_v31 = vpop.permute.xlu0 %751  ;;  %v947_v60 = vmax.f32 %v1889_v18, %v946_v9 }
 0x192   :  { %1318 = vset.pattern.permute.xlu1 %v1597_v27  ;;  %v813_v27 = vmax.f32 %v1895_v31, %v1929_v42 }
 0x193   :  { %891 = vperm.xlu1 %1318, %v1729_v3   ;;  %v1891_v19 = vpop.permute.xlu1 %940 }
 0x194   :  { %v1899_v21 = vpop.permute.xlu0 %926 }
 0x197   :  { %1320 = vset.pattern.permute.xlu1 %v1598_v30  ;;  %v1893_v20 = vpop.permute.xlu1 %958  ;;  %v1954_v30 = vrot.slane %v1802_v50, %v1919_v35 }
 0x198   :  { %1061 = vperm.xlu1 %1320, %v1055_v0   ;;  %v1903_v23 = vpop.permute.xlu0 %843  ;;  %v1957_v0 = vrot.slane %v1802_v50, %v864_v39  ;;  %v725_v39 = vmin.f32 %v1840_v51, %v1834_v44  ;;  %v741_v51 = vmax.f32 %v1845_v55, %v1838_v49  ;;  %v1011_v55 = vmin.f32 %v1889_v18, %v946_v9 }
 0x19b   :  { %v1897_v3 = vpop.permute.xlu1 %968 }
 0x19c   :  { %1066 = vperm.xlu1 %1320, %v1056_v15   ;;  %v1907_v25 = vpop.permute.xlu0 %873  ;;  %v1960_v15 = vrot.slane %v1909_v26, %v561_v58  ;;  %v811_v58 = vmax.f32 %v1849_v57, 0.0  ;;  %v979_v62 = vmax.f32 %v1897_v3, %v1946_v10 }
 0x19d   :  { %2195 = vst [vmem:[#allocation30_spill] sm:$0xff] %v1907_v25 }
 0x19e   :  { %v981_v18 = vsub.f32 %v965_v13, %v979_v62 }
 0x19f   :  { %v1901_v22 = vpop.permute.xlu1 %747 }
 0x1a0   :  { %1122 = vperm.xlu1 %1320, %v1112_v16  }
 0x1a3   :  { %v1905_v24 = vpop.permute.xlu1 %761 }
 0x1a4   :  { %v814_v25 = vmin.f32 %v1905_v24, %v1933_v46 }
 0x1a7   :  { %v1912_v32 = vpop.permute.xlu1 %765 }
 0x1a8   :  { %v815_v52 = vmin.f32 %v1912_v32, %v1933_v46  ;;  %v773_v6 = vmax.f32 %v1912_v32, %v1933_v46 }
 0x1aa   :  { %v817_v33 = vsub.f32 %v813_v27, %v815_v52  ;;  %v933_v27 = vmin.f32 %v1887_v17, %v932_v7  ;;  %v1010_v52 = vmax.f32 %v1899_v21, %v932_v7  ;;  %v1012_v17 = vmin.f32 %v1891_v19, %v946_v9 }
 0x1ab   :  { %v1916_v34 = vpop.permute.xlu1 %839 }
 0x1ac   :  { %v819_v28 = vmax.f32 %v817_v33, 0.0  ;;  %v949_v54 = vsub.f32 %v933_v27, %v947_v60  ;;  %v1018_v33 = vmax.f32 %v1893_v20, %v1943_v8 }
 0x1ae   :  { %v2015_v60 = vmul.f32 %v819_v28, %v811_v58  ;;  %v951_v13 = vmax.f32 %v949_v54, 0.0 }
 0x1af   :  { %v1939_v56 = vpop.permute.xlu1 %855 }
 0x1b0   :  { %v825_v32 = vmax.f32 %v2015_v60, 1e-12 }
 0x1b2   :  { %1387 = vrcp.f32 %v825_v32 }
 0x1b3   :  { %v1985_v41 = vpop.permute.xlu1 %859 }
 0x1b7   :  { %v2017_v27 = vpop.permute.xlu1 %877 }
 0x1db   :  { %v1914_v1 = vpop.permute.xlu0 %551 }
 0x1dc   :  { %2196 = vst [vmem:[#allocation31_spill] sm:$0xff] %v1914_v1  ;;  %v920_v1 = vmul.f32 %v918_v14, %v916_v29  ;;  %v812_v14 = vmax.f32 %v1901_v22, %v1929_v42  ;;  %v772_v29 = vmax.f32 %v1905_v24, %v1933_v46 }
 0x1df   :  { %v1923_v38 = vpop.permute.xlu0 %556 }
 0x1e0   :  { %2197 = vst [vmem:[#allocation32_spill] sm:$0xff] %v1923_v38  ;;  %v1019_v38 = vmin.f32 %v1897_v3, %v1946_v10  ;;  %v966_v3 = vmin.f32 %v1893_v20, %v1943_v8  ;;  %v983_v10 = vmax.f32 %v981_v18, 0.0 }
 0x1e2   :  { %v982_v54 = vsub.f32 %v966_v3, %v980_v59  ;;  %v2039_v24 = vmul.f32 %v983_v10, %v951_v13 }
 0x1e3   :  { %v1962_v16 = vpop.permute.xlu0 %567 }
 0x1e4   :  { %2199 = vst [vmem:[#allocation34_spill] sm:$0xff] %v1962_v16  ;;  %v705_v16 = vsub.f32 %v1825_v37, %v1828_v40  ;;  %v948_v37 = vmax.f32 %v1891_v19, %v946_v9  ;;  %v1014_v40 = vsub.f32 %v1010_v52, %v1012_v17  ;;  %v1021_v19 = vsub.f32 %v1017_v12, %v1019_v38  ;;  %v2037_v17 = vpop.permute.xlu1 %581 }
 0x1e5   :  { %v759_v9 = vmin.f32 %v1895_v31, %v1929_v42  ;;  %v816_v12 = vsub.f32 %v812_v14, %v814_v25  ;;  %v808_v31 = vsub.f32 %v804_v47, %v806_v36 }
 0x1e6   :  { %v707_v62 = vrot.slane %v705_v16, 1  ;;  %v1016_v8 = vmax.f32 %v1014_v40, 0.0 }
 0x1e7   :  { %v2000_v57 = vpop.permute.xlu0 %572  ;;  %v775_v38 = vsub.f32 %v759_v9, %v773_v6 }
 0x1e8   :  { %2203 = vst [vmem:[#allocation38_spill] sm:$0xff] %v2000_v57  ;;  %v934_v57 = vmin.f32 %v1899_v21, %v932_v7  ;;  %v1013_v21 = vsub.f32 %v1009_v5, %v1011_v55  ;;  %v1022_v7 = vsub.f32 %v1018_v33, %v1020_v63  ;;  %v998_v5 = vrot.slane %v920_v1, %v1919_v35 }
 0x1e9   :  { %v709_v52 = vmul.f32 %v707_v62, %v705_v16  ;;  %v1023_v55 = vmax.f32 %v1021_v19, 0.0  ;;  %v743_v33 = vsub.f32 %v725_v39, %v741_v51  ;;  %v984_v1 = vmax.f32 %v982_v54, 0.0 }
 0x1ea   :  { %v950_v28 = vsub.f32 %v934_v57, %v948_v37  ;;  %v1024_v58 = vmax.f32 %v1022_v7, 0.0  ;;  %v758_v57 = vmin.f32 %v1901_v22, %v1929_v42  ;;  %v1015_v63 = vmax.f32 %v1013_v21, 0.0 }
 0x1eb   :  { %v2029_v20 = vpop.permute.xlu0 %586  ;;  %v818_v35 = vmax.f32 %v816_v12, 0.0  ;;  %v777_v16 = vmax.f32 %v775_v38, 0.0  ;;  %v793_v47 = vrot.slane %v709_v52, %v1806_v53  ;;  %v2204_v22 = vmax.f32 %v1885_v2, %v1838_v49 }
 0x1ec   :  { %v952_v18 = vmax.f32 %v950_v28, 0.0  ;;  %v2041_v37 = vmul.f32 %v1024_v58, %v1016_v8  ;;  %v774_v59 = vsub.f32 %v758_v57, %v772_v29  ;;  %v2205_v42 = vmin.f32 %v1830_v43, %v1834_v44 }
 0x1ed   :  { %v2050_v36 = vmul.f32 %v1023_v55, %v1015_v63  ;;  %v2206_v51 = vsub.s32 1, %v1797_v45  ;;  %v810_v62 = vmax.f32 %v808_v31, 0.0  ;;  %v745_v13 = vmax.f32 %v743_v33, 0.0  ;;  %v1388_v33 = vpop.eup %1387 }
 0x1ee   :  { %v742_v39 = vsub.f32 %v2205_v42, %v2204_v22  ;;  %v2060_v21 = vmul.f32 %v984_v1, %v952_v18  ;;  %v1077_v2 = vmul.f32 2.0, %v1851_v61  ;;  %v1030_v43 = vmax.f32 %v2041_v37, 1e-12 }
 0x1ef   :  { %v2055_v40 = vrot.slane %v1802_v50, %v2206_v51  ;;  %v776_v44 = vmax.f32 %v774_v59, 0.0  ;;  %v2065_v9 = vmul.f32 %v818_v35, %v810_v62  ;;  %v2070_v10 = vmul.f32 %v777_v16, %v745_v13  ;;  %v2210_v13 = vld [vmem:[#allocation31_spill] sm:$0xff] }
 0x1f0   :  { %v744_v14 = vmax.f32 %v742_v39, 0.0  ;;  %v1029_v8 = vmax.f32 %v2050_v36, 1e-12  ;;  %v2075_v61 = vrot.slane %v1909_v26, %v1800_v48  ;;  %v851_v29 = vsub.f32 %v1903_v23, %v1954_v30 }
 0x1f1   :  { %v2207_v12 = vsub.s32 4, %v1797_v45  ;;  %v867_v52 = vsub.f32 %v1985_v41, %v1957_v0  ;;  %v824_v58 = vmax.f32 %v2065_v9, 1e-12  ;;  %v2090_v63 = vadd.f32 1.0, %v1077_v2 }
 0x1f2   :  { %v2086_v31 = vmul.f32 %v776_v44, %v744_v14  ;;  %v853_v41 = vand.u32 2147483647, %v851_v29  ;;  %v885_v35 = vsub.f32 %v2017_v27, %v1960_v15  ;;  %v1129_v42 = vmul.f32 2.0, %v1866_v11  ;;  %v2212_v11 = vld [vmem:[#allocation32_spill] sm:$0xff] }
 0x1f3   :  { %v1146_v38 = vrot.slane %v1909_v26, %v2207_v12  ;;  %v2108_v39 = vmul.f32 2.0, %v1857_v4  ;;  %v850_v45 = vsub.f32 %v1916_v34, %v1954_v30  ;;  %v2213_v12 = vld [vmem:[#allocation33_spill] sm:$0xff] }
 0x1f4   :  { %v887_v34 = vand.u32 2147483647, %v885_v35 }
 0x1f7   :  { %v989_v46 = vpop.permute.xlu0 %988 }
 0x1f8   :  { %v999_v25 = vadd.f32 %v998_v5, %v989_v46 }
 0x1fa   :  { %v2058_v3 = vsub.f32 %v999_v25, %v2039_v24  ;;  %v2208_v25 = vmov %v2206_v51 }
 0x1fb   :  { %v993_v6 = vpop.permute.xlu1 %992  ;;  %v2101_v1 = vrot.slane %v1909_v26, %v2208_v25  ;;  %v866_v26 = vsub.f32 %v1939_v56, %v1957_v0  ;;  %v594_v0 = vmul.f32 %v2055_v40, %v2029_v20  ;;  %v2217_v20 = vld [vmem:[#allocation34_spill] sm:$0xff] }
 0x1fc   :  { %v1000_v49 = vadd.f32 %v998_v5, %v993_v6  ;;  %v1003_v7 = vmax.f32 %v2058_v3, 1e-12  ;;  %v788_v19 = vpop.permute.xlu0 %787  ;;  %v2209_v6 = vld [vmem:[#allocation30_spill] sm:$0xff] }
 0x1fd   :  { %v795_v28 = vadd.f32 %v793_v47, %v788_v19  ;;  %v884_v27 = vsub.f32 %v2209_v6, %v1960_v15  ;;  %v1027_v15 = vsub.f32 %v2050_v36, %v2058_v3  ;;  %v868_v29 = vand.u32 2147483647, %v866_v26  ;;  %v2218_v36 = vld [vmem:[#allocation38_spill] sm:$0xff] }
 0x1fe   :  { %v2068_v50 = vsub.f32 %v1000_v49, %v2060_v21  ;;  %1389 = vrcp.f32 %v1003_v7  ;;  %v2211_v49 = vld [vmem:[#allocation36_spill] sm:$0xff]  ;;  %v1131_v6 = vadd.f32 1.0, %v1129_v42 }
 0x1ff   :  { %v797_v5 = vsub.f32 %v795_v28, %v2070_v10  ;;  %1391 = vrcp.f32 %v1030_v43  ;;  %v563_v2 = vmul.f32 %v2211_v49, %v2210_v13  ;;  %v564_v43 = vmul.f32 %v2211_v49, %v2212_v11  ;;  %v2219_v13 = vld [vmem:[#allocation27_spill] sm:$0xff] }
 0x200   :  { %v1004_v32 = vmax.f32 %v2068_v50, 1e-12  ;;  %v783_v54 = vpop.permute.xlu1 %782  ;;  %v1028_v56 = vsub.f32 %v2041_v37, %v2068_v50  ;;  %v2214_v37 = vrot.slane %v2213_v12, %v1806_v53 }
 0x201   :  { %v794_v48 = vadd.f32 %v793_v47, %v783_v54  ;;  %v799_v23 = vmax.f32 %v797_v5, 1e-12  ;;  %v823_v55 = vsub.f32 %v2015_v60, %v797_v5  ;;  %v1084_v57 = vpop.permute.xlu0 %1083  ;;  %v869_v60 = vand.u32 2147483647, %v867_v52 }
 0x202   :  { %1393 = vrcp.f32 %v1004_v32  ;;  %v1095_v46 = vadd.f32 %v2075_v61, %v1084_v57  ;;  %v593_v32 = vmul.f32 %v2055_v40, %v2037_v17  ;;  %vm2132_vm6 = vcmp.eq.s32.totalorder %v2214_v37, 1 }
 0x203   :  { %1395 = vrcp.f32 %v1029_v8  ;;  %v2093_v18 = vsub.f32 %v794_v48, %v2086_v31  ;;  %v2096_v59 = vmul.f32 %v1388_v33, %v823_v55  ;;  %v871_v19 = vadd.f32 %v869_v60, %v853_v41 }
 0x204   :  { %1397 = vrcp.f32 %v799_v23  ;;  %v1097_v47 = vadd.f32 1.0, %v1095_v46  ;;  %v852_v8 = vand.u32 2147483647, %v850_v45  ;;  %v575_v52 = vadd.f32 %v2217_v20, %v563_v2  ;;  %v2222_v20 = vld [vmem:[#allocation35_spill] sm:$0xff] }
 0x205   :  { %v798_v16 = vmax.f32 %v2093_v18, 1e-12  ;;  %v1136_v22 = vpop.permute.xlu1 %1135  ;;  %1399 = vrcp.f32 %v824_v58  ;;  %v576_v3 = vadd.f32 %v2218_v36, %v564_v43  ;;  %v886_v23 = vand.u32 2147483647, %v884_v27 }
 0x206   :  { %v1147_v51 = vadd.f32 %v1146_v38, %v1136_v22  ;;  %v896_v62 = vpop.permute.xlu0 %895  ;;  %v889_v55 = vadd.f32 %v887_v34, %v871_v19  ;;  %v822_v41 = vsub.f32 %v2065_v9, %v2093_v18  ;;  %v870_v22 = vadd.f32 %v868_v29, %v852_v8 }
 0x207   :  { %1401 = vrcp.f32 %v798_v16  ;;  %v903_v44 = vsub.f32 %v896_v62, %v2101_v1  ;;  %v596_v53 = vadd.f32 %v594_v0, %v576_v3  ;;  %v2223_v3 = vld [vmem:[#allocation25_spill] sm:$0xff] }
 0x208   :  { %v1149_v4 = vadd.f32 1.0, %v1147_v51  ;;  %v1390_v7 = vpop.eup %1389  ;;  %1403 = vrcp.f32 %v1097_v47  ;;  %v595_v51 = vadd.f32 %v593_v32, %v575_v52  ;;  %v888_v19 = vadd.f32 %v886_v23, %v870_v22 }
 0x209   :  { %v1141_v30 = vpop.permute.xlu1 %1140  ;;  %v1392_v14 = vpop.eup %1391  ;;  %v905_v5 = vand.u32 2147483647, %v903_v44  ;;  %v598_v18 = vmul.f32 2.0, %v596_v53 }
 0x20a   :  { %1405 = vrcp.f32 %v1149_v4  ;;  %v1148_v28 = vadd.f32 %v1146_v38, %v1141_v30  ;;  %v1006_v38 = vmul.f32 %v1390_v7, %v2039_v24  ;;  %v1034_v40 = vmul.f32 %v1392_v14, %v1028_v56  ;;  %v2221_v14 = vld [vmem:[#allocation37_spill] sm:$0xff] }
 0x20b   :  { %v1118_v25 = vpop.permute.xlu0 %1117  ;;  %v907_v16 = vadd.f32 %v905_v5, %v889_v55  ;;  %v597_v42 = vmul.f32 2.0, %v595_v51  ;;  %v672_v8 = vadd.f32 %v2221_v14, %v598_v18 }
 0x20c   :  { %v1394_v54 = vpop.eup %1393  ;;  %v1150_v48 = vadd.f32 1.0, %v1148_v28  ;;  %v1125_v9 = vsub.f32 %v1118_v25, %v2219_v13  ;;  %v2220_v28 = vld [vmem:[#allocation28_spill] sm:$0xff] }
 0x20d   :  { %v1396_v58 = vpop.eup %1395  ;;  %v1008_v17 = vmul.f32 %v1394_v54, %v2060_v21  ;;  %v1089_v57 = vpop.permute.xlu1 %1088  ;;  %v909_v4 = vmul.f32 5.0, %v907_v16  ;;  %v671_v52 = vadd.f32 %v2222_v20, %v597_v42  ;;  %v2224_v16 = vld [vmem:[#allocation26_spill] sm:$0xff] }
 0x20e   :  { %v1398_v33 = vpop.eup %1397  ;;  %v1032_v46 = vmul.f32 %v1396_v58, %v1027_v15  ;;  %v1096_v60 = vadd.f32 %v2075_v61, %v1089_v57  ;;  %1407 = vrcp.f32 %v1150_v48  ;;  %v1127_v0 = vmul.f32 0.015625, %v1125_v9 }
 0x20f   :  { %v803_v35 = vmul.f32 %v1398_v33, %v2070_v10  ;;  %v1036_v24 = vsub.f32 %v1008_v17, %v1034_v40  ;;  %v1400_v47 = vpop.eup %1399 }
 0x210   :  { %v1098_v21 = vadd.f32 1.0, %v1096_v60  ;;  %v1035_v45 = vsub.f32 %v1006_v38, %v1032_v46  ;;  %v827_v49 = vmul.f32 %v1400_v47, %v822_v41  ;;  %v1157_v55 = vmul.f32 2.0, %v1127_v0 }
 0x211   :  { %v1402_v26 = vpop.eup %1401  ;;  %v831_v27 = vsub.f32 %v803_v35, %v2096_v59  ;;  %v1038_v62 = vsub.f32 0.0, %v1036_v24 }
 0x212   :  { %v801_v61 = vmul.f32 %v1402_v26, %v2086_v31  ;;  %1409 = vrcp.f32 %v1098_v21  ;;  %v892_v10 = vpop.permute.xlu1 %891  ;;  %v1404_v2 = vpop.eup %1403  ;;  %v1037_v59 = vsub.f32 0.0, %v1035_v45  ;;  %v1130_v31 = vmul.f32 2.0, %v2220_v28 }
 0x213   :  { %v833_v11 = vsub.f32 0.0, %v831_v27  ;;  %v1040_v43 = vmul.f32 2.0, %v1038_v62  ;;  %v902_v44 = vsub.f32 %v892_v10, %v2101_v1  ;;  %v1100_v12 = vmul.f32 %v1404_v2, %v2090_v63 }
 0x214   :  { %v1406_v7 = vpop.eup %1405  ;;  %v830_v34 = vsub.f32 %v801_v61, %v827_v49  ;;  %v1039_v40 = vmul.f32 2.0, %v1037_v59  ;;  %v1132_v57 = vadd.f32 1.0, %v1130_v31  ;;  %v1080_v63 = vadd.f32 1.0, %v2108_v39  ;;  %v2225_v61 = vld [vmem:[#allocation29_spill] sm:$0xff] }
 0x215   :  { %v1042_v56 = vadd.f32 %v1040_v43, %v909_v4  ;;  %v1152_v30 = vmul.f32 %v1406_v7, %v1131_v6  ;;  %v904_v15 = vand.u32 2147483647, %v902_v44  ;;  %v835_v32 = vmul.f32 2.0, %v833_v11 }
 0x216   :  { %v832_v29 = vsub.f32 0.0, %v830_v34  ;;  %v1103_v60 = vsub.f32 1.0, %v1100_v12 }
 0x217   :  { %v1155_v5 = vsub.f32 1.0, %v1152_v30  ;;  %v906_v54 = vadd.f32 %v904_v15, %v888_v19  ;;  %v1062_v1 = vpop.permute.xlu1 %1061  ;;  %v1050_v37 = vsel %vm2132_vm6, %v1042_v56, 0.0  ;;  %v837_v48 = vadd.f32 %v835_v32, %v672_v8 }
 0x218   :  { %v834_v36 = vmul.f32 2.0, %v832_v29  ;;  %v1069_v38 = vsub.f32 %v1062_v1, %v2223_v3  ;;  %v1408_v58 = vpop.eup %1407  ;;  %v1105_v27 = vmul.f32 2.0, %v1103_v60 }
 0x219   :  { %v1159_v23 = vmul.f32 2.0, %v1155_v5  ;;  %v908_v17 = vmul.f32 5.0, %v906_v54  ;;  %v1052_v46 = vadd.f32 %v1050_v37, %v837_v48  ;;  %v1154_v22 = vmul.f32 %v1408_v58, %v1132_v57 }
 0x21a   :  { %v836_v33 = vadd.f32 %v834_v36, %v671_v52  ;;  %v1071_v53 = vmul.f32 0.015625, %v1069_v38 }
 0x21b   :  { %v1161_v41 = vadd.f32 %v1159_v23, %v1157_v55  ;;  %v1041_v25 = vadd.f32 %v1039_v40, %v908_v17  ;;  %v1067_v35 = vpop.permute.xlu1 %1066  ;;  %v1156_v18 = vsub.f32 1.0, %v1154_v22 }
 0x21c   :  { %v1410_v24 = vpop.eup %1409  ;;  %v1070_v47 = vsub.f32 %v1067_v35, %v2224_v16  ;;  %v1073_v26 = vmul.f32 2.0, %v1071_v53 }
 0x21d   :  { %v1049_v51 = vsel %vm2132_vm6, %v1041_v25, 0.0  ;;  %v1102_v21 = vmul.f32 %v1410_v24, %v1080_v63  ;;  %v1163_v4 = vsel %vm2132_vm6, %v1161_v41, 0.0  ;;  %v1160_v7 = vmul.f32 2.0, %v1156_v18 }
 0x21e   :  { %v1051_v45 = vadd.f32 %v1049_v51, %v836_v33  ;;  %v1072_v6 = vmul.f32 0.015625, %v1070_v47 }
 0x21f   :  { %v1104_v62 = vsub.f32 1.0, %v1102_v21  ;;  %v1123_v13 = vpop.permute.xlu1 %1122 }
 0x220   :  { %v1075_v9 = vadd.f32 %v1073_v26, %v1051_v45  ;;  %v1074_v39 = vmul.f32 2.0, %v1072_v6  ;;  %v1126_v49 = vsub.f32 %v1123_v13, %v2225_v61 }
 0x221   :  { %v1106_v10 = vmul.f32 2.0, %v1104_v62 }
 0x222   :  { %v1107_v2 = vadd.f32 %v1105_v27, %v1075_v9  ;;  %v1076_v11 = vadd.f32 %v1074_v39, %v1052_v46  ;;  %v1128_v43 = vmul.f32 0.015625, %v1126_v49 }
 0x224   :  { %v1108_v44 = vadd.f32 %v1106_v10, %v1076_v11  ;;  %v1158_v19 = vmul.f32 2.0, %v1128_v43  ;;  %v1165_v42 = vadd.f32 %v1163_v4, %v1107_v2 }
 0x226   :  { %v1162_v34 = vadd.f32 %v1160_v7, %v1158_v19  ;;  %1167 = vst [vmem:[#allocation19] sm:$0xff] %v1165_v42 }
 0x228   :  { %v1164_v59 = vsel %vm2132_vm6, %v1162_v34, 0.0 }
 0x229   :  { %v1166_v56 = vadd.f32 %v1164_v59, %v1108_v44 }
 0x22b   :  { %1168 = vst [vmem:[#allocation19 + $0x8] sm:$0xff] %v1166_v56 }
 0x22c   :  { %1554 = shalt.err (!%p1551_p10)
}
 0x22d   :  { %s1555_s29 = scalar_lea.hbm %s2185_s6, 256 }
 0x22e   :  { %p1556_p11 = scmp.ne.s32.totalorder %s2185_s6, %s1555_s29  ;;  %p1559_p12 = scmp.lt.u32.totalorder %s1555_s29, %s2185_s6 }
 0x230   :  { %p1561_p13 = pnand %p1559_p12, %p1556_p11 }
 0x232   :  { %1564 = shalt.err (!%p1561_p13)
}
 0x233   :  { %1180 = dma.vmem_to_hbm [thread:$0]  %s1175_s14, 256, %s2185_s6, [#allocation10], %s1580_s22, %s1580_s22, %s1581_s23  }
 0x234   :  { %1573 = dma.done.wait [#allocation10], 256  }
 0x235   :  { %1574 = vsyncadd [#allocation10], 4294967040 }
 0x236   :  { %1184 = vsyncpa [#allocation9], 1 }
 0x237   :  { %1185 = vsyncpa [#allocation12], 1 }
 0x238   :  { %1186 = vsyncpa [#allocation15], 1 }
 0x239   :  { %1187 = vsyncpa [#allocation18], 1 }
 0x23a   :  { %1188 = vsyncpa [#allocation10], 1 }

</bundles_post_ra>
